<compile_context>
chip_gen: v7x
topology: tpu7x:2x2x1
jax: 0.10.0
libtpu: 0.0.40
codegen_flags: <defaults>
</compile_context>

<pallas_src>
from functools import partial

import numpy as np

import jax
import jax.numpy as jnp
from jax.experimental import pallas as pl
from jax.experimental.pallas import tpu as pltpu


def _round_up(n, m):
    return -(-n // m) * m


# ----------------------------------------------------------------------------
# Fused kernel factory: whole network for one batch tile of size `bt`
# ----------------------------------------------------------------------------
def _make_net_kernel(bt):
    f32 = jnp.float32

    def kernel(x_ref, w1_ref, b1_ref, w2_ref, b2_ref, wf_ref, bf_ref,
               out_ref, c1_ref, s2_ref, c2_ref, p2_ref):
        # ---- conv1 (5x5, pad 2) + bias + ReLU + W-direction pool -----------
        # x_ref: (28*bt, 160); rows = out_row*bt + b, lanes = di*32 + padded_col
        # (the 5 kernel-row shifts are pre-stacked along lanes by the wrapper),
        # so the whole convolution is ONE K=160 MXU matmul.
        acc1 = jnp.dot(x_ref[...], w1_ref[...], preferred_element_type=f32)
        y1 = jnp.maximum(acc1 + b1_ref[...], 0.0)                # (28*bt, 256)
        # output lanes = wi*128 + wo*8 + c with out_col = 2*wo + wi, so the W
        # half of the 2x2 max-pool is a max of the two 128-lane halves.
        c1_ref[...] = jnp.maximum(y1[:, 0:128], y1[:, 128:256])  # (28*bt, 128)

        # ---- H max-pool + scatter into conv2's fused-K staging buffer ------
        # s2_ref: (14*bt, 640); rows = conv2_out_row*bt + b,
        #         lanes = di*128 + (u*8 + c)   (u = pooled1 col, c = channel).
        # pooled1 row hp feeds conv2 rows r = hp + 2 - di (di = 0..4).  The 6
        # (r, di) blocks that correspond to H padding are never written by the
        # scatter, so zero them here (every step -> megacore-safe).
        zero_blk = jnp.zeros((bt, 128), f32)
        for r, di in ((0, 0), (0, 1), (1, 0), (12, 4), (13, 3), (13, 4)):
            s2_ref[r * bt:(r + 1) * bt, di * 128:(di + 1) * 128] = zero_blk
        for hp in range(14):
            r0 = 2 * hp * bt
            m = jnp.maximum(c1_ref[r0:r0 + bt, :],
                            c1_ref[r0 + bt:r0 + 2 * bt, :])      # (bt, 128)
            for di in range(5):
                r = hp + 2 - di
                if 0 <= r < 14:
                    s2_ref[r * bt:(r + 1) * bt, di * 128:(di + 1) * 128] = m

        # ---- conv2 (5x5, pad 2) + bias + ReLU + W-direction pool -----------
        # ONE K=640 matmul (all 5 kernel-row bands at once).
        acc2 = jnp.dot(s2_ref[...], w2_ref[...], preferred_element_type=f32)
        y2 = jnp.maximum(acc2 + b2_ref[...], 0.0)                # (14*bt, 256)
        c2_ref[...] = jnp.maximum(y2[:, 0:128], y2[:, 128:256])  # (14*bt, 128)

        # ---- H max-pool -> pooled2 laid out as (bt, 896) -------------------
        # lanes = hh*128 + ww*16 + c2, so the FC becomes ONE K=896 matmul.
        for hh in range(7):
            r0 = 2 * hh * bt
            p2_ref[:, hh * 128:(hh + 1) * 128] = jnp.maximum(
                c2_ref[r0:r0 + bt, :], c2_ref[r0 + bt:r0 + 2 * bt, :])

        # ---- FC (NCHW flatten folded into wf) + masked log_softmax ---------
        logits = jnp.dot(p2_ref[...], wf_ref[...], preferred_element_type=f32)
        logits = logits + bf_ref[...]                            # (bt, 128)
        col = jax.lax.broadcasted_iota(jnp.int32, (bt, 128), 1)
        valid = col < 10
        logits = jnp.where(valid, logits, -jnp.inf)
        mx = jnp.max(logits, axis=-1, keepdims=True)
        sh = logits - mx
        lse = jnp.log(jnp.sum(jnp.exp(sh), axis=-1, keepdims=True))
        # lane-dense (bt, 128) store; the wrapper slices lanes [:10].
        out_ref[...] = jnp.where(valid, sh - lse, 0.0)

    return kernel


# ----------------------------------------------------------------------------
# One-time host-side weight packing (fused banded conv matrices, permuted FC)
# ----------------------------------------------------------------------------
def pack_params(params):
    w1 = np.asarray(params["conv1_w"], np.float32)   # (8, 1, 5, 5)
    b1 = np.asarray(params["conv1_b"], np.float32)   # (8,)
    w2 = np.asarray(params["conv2_w"], np.float32)   # (16, 8, 5, 5)
    b2 = np.asarray(params["conv2_b"], np.float32)   # (16,)
    wf = np.asarray(params["fc_w"], np.float32)      # (10, 784)
    bf = np.asarray(params["fc_b"], np.float32)      # (10,)

    # conv1 fused over the 5 kernel-row shifts: K = 5*32 = 160.
    # LHS lanes = di*32 + padded_col; output lanes = wi*128 + wo*8 + c with
    # output col w = 2*wo + wi.
    W1 = np.zeros((5 * 32, 256), np.float32)
    B1 = np.zeros((1, 256), np.float32)
    for w in range(28):
        wo, wi = divmod(w, 2)
        col = wi * 128 + wo * 8
        B1[0, col:col + 8] = b1
        for di in range(5):
            for dj in range(5):
                W1[di * 32 + w + dj, col:col + 8] = w1[:, 0, di, dj]

    # conv2 fused over the 5 kernel-row shifts: K = 5*128 = 640.
    # LHS lanes = di*128 + u*8 + c (u = pooled1 col); output lanes =
    # wi2*128 + wo2*16 + c2 with output col wpos = 2*wo2 + wi2 (W pad folded).
    W2 = np.zeros((5 * 128, 256), np.float32)
    B2 = np.zeros((1, 256), np.float32)
    for wpos in range(14):
        wo2, wi2 = divmod(wpos, 2)
        col = wi2 * 128 + wo2 * 16
        B2[0, col:col + 16] = b2
        for di in range(5):
            for dj in range(5):
                u = wpos + dj - 2
                if 0 <= u < 14:
                    W2[di * 128 + u * 8: di * 128 + u * 8 + 8,
                       col:col + 16] = w2[:, :, di, dj].T

    # FC: pooled2 lanes = hh*128 + ww*16 + c2; PyTorch flatten order is
    # (c2, hh, ww), permuted here once.  Output padded to 128 lanes
    # (columns 10..127 zero) so the kernel's store is lane-dense.
    WF = np.zeros((7 * 128, 128), np.float32)
    for hh in range(7):
        for ww in range(7):
            for c2 in range(16):
                WF[hh * 128 + ww * 16 + c2, 0:10] = wf[:, c2 * 49 + hh * 7 + ww]
    BF = np.zeros((1, 128), np.float32)
    BF[0, 0:10] = bf

    packed = {"W1": W1, "B1": B1, "W2": W2, "B2": B2, "WF": WF, "BF": BF}
    return {k: jnp.asarray(v) for k, v in packed.items()}


def init_params(key):
    k1, k2, k3, k4, k5, k6 = jax.random.split(key, 6)
    return {
        "conv1_w": 0.1 * jax.random.normal(k1, (8, 1, 5, 5), jnp.float32),
        "conv1_b": 0.1 * jax.random.normal(k2, (8,), jnp.float32),
        "conv2_w": 0.1 * jax.random.normal(k3, (16, 8, 5, 5), jnp.float32),
        "conv2_b": 0.1 * jax.random.normal(k4, (16,), jnp.float32),
        "fc_w": 0.05 * jax.random.normal(k5, (10, 16 * 7 * 7), jnp.float32),
        "fc_b": 0.05 * jax.random.normal(k6, (10,), jnp.float32),
    }


# ----------------------------------------------------------------------------
# Forward: single fused pallas_call, grid over batch tiles
# ----------------------------------------------------------------------------
def net_forward(x_nchw, packed, bt=None):
    """Forward pass. `bt` = batch tile (multiple of 8); auto-chosen if None."""
    B = x_nchw.shape[0]
    if bt is None:
        bt = min(64, _round_up(B, 8))
        if B > 8:  # keep >= 2 grid steps when possible (v7x has 2 TensorCores)
            bt = min(bt, max(8, _round_up(-(-B // 2), 8)))
    return _net_forward(x_nchw, packed, bt)


@partial(jax.jit, static_argnums=(2,))
def _net_forward(x_nchw, packed, bt):
    assert bt % 8 == 0
    B = x_nchw.shape[0]
    nb = -(-B // bt)
    Bp = nb * bt

    # Pad batch to a multiple of bt, pad spatially by 2, lay each batch tile
    # out row-major as (padded_row, batch_in_tile), then stack the 5 kernel-
    # row shifts along lanes so conv1 is a single K=160 matmul in the kernel.
    x = x_nchw[:, 0, :, :]
    x = jnp.pad(x, ((0, Bp - B), (2, 2), (2, 2)))                  # (Bp,32,32)
    x = x.reshape(nb, bt, 32, 32).transpose(0, 2, 1, 3).reshape(nb, 32 * bt, 32)
    xs = jnp.concatenate(
        [x[:, di * bt: di * bt + 28 * bt, :] for di in range(5)], axis=-1)

    grid_spec = pltpu.PrefetchScalarGridSpec(
        num_scalar_prefetch=0,
        grid=(nb,),
        in_specs=[
            pl.BlockSpec((None, 28 * bt, 160), lambda i: (i, 0, 0)),  # x tile
            pl.BlockSpec((160, 256), lambda i: (0, 0)),               # W1
            pl.BlockSpec((1, 256), lambda i: (0, 0)),                 # b1
            pl.BlockSpec((640, 256), lambda i: (0, 0)),               # W2
            pl.BlockSpec((1, 256), lambda i: (0, 0)),                 # b2
            pl.BlockSpec((896, 128), lambda i: (0, 0)),               # Wfc
            pl.BlockSpec((1, 128), lambda i: (0, 0)),                 # bfc
        ],
        out_specs=pl.BlockSpec((bt, 128), lambda i: (i, 0)),
        scratch_shapes=[
            pltpu.VMEM((28 * bt, 128), jnp.float32),   # conv1 out (W-pooled)
            pltpu.VMEM((14 * bt, 640), jnp.float32),   # conv2 fused-K staging
            pltpu.VMEM((14 * bt, 128), jnp.float32),   # conv2 out (W-pooled)
            pltpu.VMEM((bt, 896), jnp.float32),        # pooled2 (FC input)
        ],
    )

    w_bytes = 4 * (160 * 256 + 256 + 640 * 256 + 256 + 896 * 128 + 128)
    cost = pl.CostEstimate(
        flops=2 * nb * bt * (28 * 160 * 256 + 14 * 640 * 256 + 896 * 128),
        transcendentals=nb * bt * 129,
        bytes_accessed=4 * (nb * 28 * bt * 160 + Bp * 128) + w_bytes,
    )

    out = pl.pallas_call(
        _make_net_kernel(bt),
        out_shape=jax.ShapeDtypeStruct((Bp, 128), jnp.float32),
        grid_spec=grid_spec,
        compiler_params=pltpu.CompilerParams(
            dimension_semantics=("parallel",),
            vmem_limit_bytes=48 * 1024 * 1024,
        ),
        cost_estimate=cost,
    )(xs, packed["W1"], packed["B1"], packed["W2"], packed["B2"],
      packed["WF"], packed["BF"])
    return out[:B, :10]


# ----------------------------------------------------------------------------
# Pure-JAX reference (mirrors the PyTorch module) for validation
# ----------------------------------------------------------------------------
def reference_forward(x_nchw, params):
    x = jnp.transpose(x_nchw, (0, 2, 3, 1))
    y = jax.lax.conv_general_dilated(
        x, jnp.transpose(params["conv1_w"], (2, 3, 1, 0)), (1, 1),
        ((2, 2), (2, 2)), dimension_numbers=("NHWC", "HWIO", "NHWC"))
    y = jax.nn.relu(y + params["conv1_b"])
    y = jax.lax.reduce_window(y, -jnp.inf, jax.lax.max,
                              (1, 2, 2, 1), (1, 2, 2, 1), "VALID")
    y = jax.lax.conv_general_dilated(
        y, jnp.transpose(params["conv2_w"], (2, 3, 1, 0)), (1, 1),
        ((2, 2), (2, 2)), dimension_numbers=("NHWC", "HWIO", "NHWC"))
    y = jax.nn.relu(y + params["conv2_b"])
    y = jax.lax.reduce_window(y, -jnp.inf, jax.lax.max,
                              (1, 2, 2, 1), (1, 2, 2, 1), "VALID")
    feat = jnp.transpose(y, (0, 3, 1, 2)).reshape(x.shape[0], 16 * 7 * 7)
    logits = feat @ params["fc_w"].T + params["fc_b"]
    return jax.nn.log_softmax(logits, axis=-1)


if __name__ == "__main__":
    key = jax.random.PRNGKey(0)
    k_x, k_p = jax.random.split(key)
    params = init_params(k_p)
    packed = pack_params(params)

    # --- small MNIST-shaped batch (single-tile path) -------------------------
    x_small = jax.random.normal(k_x, (2, 1, 28, 28), jnp.float32)
    out_s = jax.block_until_ready(net_forward(x_small, packed))
    ref_s = jax.block_until_ready(reference_forward(x_small, params))
    assert out_s.shape == (2, 10)
    assert bool(jnp.allclose(jnp.sum(jnp.exp(out_s), axis=-1), 1.0, atol=1e-3))
    assert bool(jnp.allclose(out_s, ref_s, atol=5e-3, rtol=5e-3))

    # --- multi-tile + ragged batch (B > bt, B % bt != 0) ---------------------
    x_multi = jax.random.normal(k_x, (20, 1, 28, 28), jnp.float32)
    out_m = jax.block_until_ready(net_forward(x_multi, packed, bt=8))
    ref_m = jax.block_until_ready(reference_forward(x_multi, params))
    assert out_m.shape == (20, 10)
    assert bool(jnp.allclose(out_m, ref_m, atol=5e-3, rtol=5e-3))

    # --- large-tile (production) kernel shape: bt=64 -------------------------
    out_l = jax.block_until_ready(net_forward(x_small, packed, bt=64))
    assert bool(jnp.allclose(out_l, ref_s, atol=5e-3, rtol=5e-3))

    print("KERNEL_OK")
</pallas_src>

<mosaic_0001>
module attributes {stable_mosaic.version = 11 : i64} {
  func.func @kernel(%arg0: i32, %arg1: memref<1x224x160xf32, #tpu.memory_space<vmem>>, %arg2: memref<160x256xf32, #tpu.memory_space<vmem>>, %arg3: memref<1x256xf32, #tpu.memory_space<vmem>>, %arg4: memref<640x256xf32, #tpu.memory_space<vmem>>, %arg5: memref<1x256xf32, #tpu.memory_space<vmem>>, %arg6: memref<896x128xf32, #tpu.memory_space<vmem>>, %arg7: memref<1x128xf32, #tpu.memory_space<vmem>>, %arg8: memref<8x128xf32, #tpu.memory_space<vmem>>, %arg9: memref<224x128xf32, #tpu.memory_space<vmem>>, %arg10: memref<112x640xf32, #tpu.memory_space<vmem>>, %arg11: memref<112x128xf32, #tpu.memory_space<vmem>>, %arg12: memref<8x896xf32, #tpu.memory_space<vmem>>) attributes {dimension_semantics = [#tpu.dimension_semantics<parallel>], iteration_bounds = array<i64: 1>, scalar_prefetch = 0 : i64, scratch_operands = 4 : i64, tpu.core_type = #tpu.core_type<tc>, window_params = [{transform_indices = @transform_0, window_bounds = array<i64: 1, 224, 160>}, {pipeline_mode = #tpu.pipeline_mode<synchronous>, transform_indices = @transform_1, window_bounds = array<i64: 160, 256>}, {pipeline_mode = #tpu.pipeline_mode<synchronous>, transform_indices = @transform_2, window_bounds = array<i64: 1, 256>}, {pipeline_mode = #tpu.pipeline_mode<synchronous>, transform_indices = @transform_3, window_bounds = array<i64: 640, 256>}, {pipeline_mode = #tpu.pipeline_mode<synchronous>, transform_indices = @transform_4, window_bounds = array<i64: 1, 256>}, {pipeline_mode = #tpu.pipeline_mode<synchronous>, transform_indices = @transform_5, window_bounds = array<i64: 896, 128>}, {pipeline_mode = #tpu.pipeline_mode<synchronous>, transform_indices = @transform_6, window_bounds = array<i64: 1, 128>}, {transform_indices = @transform_7, window_bounds = array<i64: 8, 128>}]} {
    %c0 = arith.constant 0 : index
    %c0_0 = arith.constant 0 : index
    %c0_1 = arith.constant 0 : index
    %0 = vector.load %arg1[%c0, %c0_0, %c0_1] : memref<1x224x160xf32, #tpu.memory_space<vmem>>, vector<1x224x160xf32>
    %1 = vector.shape_cast %0 : vector<1x224x160xf32> to vector<224x160xf32>
    %c0_2 = arith.constant 0 : index
    %c0_3 = arith.constant 0 : index
    %2 = vector.load %arg2[%c0_2, %c0_3] : memref<160x256xf32, #tpu.memory_space<vmem>>, vector<160x256xf32>
    %cst = arith.constant dense<0.000000e+00> : vector<224x256xf32>
    %3 = tpu.matmul %1, %2, %cst {dimension_numbers = #tpu.dot_dimension_numbers<[1], [0], [0], [1], [0, 0, 1, 1], [], []>} : vector<224x160xf32>, vector<160x256xf32>, vector<224x256xf32> -> vector<224x256xf32>
    %c0_4 = arith.constant 0 : index
    %c0_5 = arith.constant 0 : index
    %4 = vector.load %arg3[%c0_4, %c0_5] : memref<1x256xf32, #tpu.memory_space<vmem>>, vector<1x256xf32>
    %5 = vector.broadcast %4 : vector<1x256xf32> to vector<224x256xf32>
    %6 = arith.addf %3, %5 : vector<224x256xf32>
    %cst_6 = arith.constant 0.000000e+00 : f32
    %7 = vector.broadcast %cst_6 : f32 to vector<224x256xf32>
    %8 = arith.maximumf %6, %7 : vector<224x256xf32>
    %9 = vector.extract_strided_slice %8 {offsets = [0, 0], sizes = [224, 128], strides = [1, 1]} : vector<224x256xf32> to vector<224x128xf32>
    %10 = vector.extract_strided_slice %8 {offsets = [0, 128], sizes = [224, 128], strides = [1, 1]} : vector<224x256xf32> to vector<224x128xf32>
    %11 = arith.maximumf %9, %10 : vector<224x128xf32>
    %c0_7 = arith.constant 0 : index
    %c0_8 = arith.constant 0 : index
    %12 = vector.load %arg9[%c0_7, %c0_8] : memref<224x128xf32, #tpu.memory_space<vmem>>, vector<224x128xf32>
    tpu.vector_store %arg9[%c0_7, %c0_8], %11 {strides = array<i32>} : memref<224x128xf32, #tpu.memory_space<vmem>>, vector<224x128xf32>,
    %cst_9 = arith.constant 0.000000e+00 : f32
    %13 = vector.broadcast %cst_9 : f32 to vector<8x128xf32>
    %c0_10 = arith.constant 0 : index
    %c0_11 = arith.constant 0 : index
    %14 = vector.load %arg10[%c0_10, %c0_11] : memref<112x640xf32, #tpu.memory_space<vmem>>, vector<8x128xf32>
    tpu.vector_store %arg10[%c0_10, %c0_11], %13 {strides = array<i32>} : memref<112x640xf32, #tpu.memory_space<vmem>>, vector<8x128xf32>,
    %c0_12 = arith.constant 0 : index
    %c128 = arith.constant 128 : index
    %15 = vector.load %arg10[%c0_12, %c128] : memref<112x640xf32, #tpu.memory_space<vmem>>, vector<8x128xf32>
    tpu.vector_store %arg10[%c0_12, %c128], %13 {strides = array<i32>} : memref<112x640xf32, #tpu.memory_space<vmem>>, vector<8x128xf32>,
    %c8 = arith.constant 8 : index
    %c0_13 = arith.constant 0 : index
    %16 = vector.load %arg10[%c8, %c0_13] : memref<112x640xf32, #tpu.memory_space<vmem>>, vector<8x128xf32>
    tpu.vector_store %arg10[%c8, %c0_13], %13 {strides = array<i32>} : memref<112x640xf32, #tpu.memory_space<vmem>>, vector<8x128xf32>,
    %c96 = arith.constant 96 : index
    %c512 = arith.constant 512 : index
    %17 = vector.load %arg10[%c96, %c512] : memref<112x640xf32, #tpu.memory_space<vmem>>, vector<8x128xf32>
    tpu.vector_store %arg10[%c96, %c512], %13 {strides = array<i32>} : memref<112x640xf32, #tpu.memory_space<vmem>>, vector<8x128xf32>,
    %c104 = arith.constant 104 : index
    %c384 = arith.constant 384 : index
    %18 = vector.load %arg10[%c104, %c384] : memref<112x640xf32, #tpu.memory_space<vmem>>, vector<8x128xf32>
    tpu.vector_store %arg10[%c104, %c384], %13 {strides = array<i32>} : memref<112x640xf32, #tpu.memory_space<vmem>>, vector<8x128xf32>,
    %c104_14 = arith.constant 104 : index
    %c512_15 = arith.constant 512 : index
    %19 = vector.load %arg10[%c104_14, %c512_15] : memref<112x640xf32, #tpu.memory_space<vmem>>, vector<8x128xf32>
    tpu.vector_store %arg10[%c104_14, %c512_15], %13 {strides = array<i32>} : memref<112x640xf32, #tpu.memory_space<vmem>>, vector<8x128xf32>,
    %c0_16 = arith.constant 0 : index
    %c0_17 = arith.constant 0 : index
    %20 = vector.load %arg9[%c0_16, %c0_17] : memref<224x128xf32, #tpu.memory_space<vmem>>, vector<8x128xf32>
    %c8_18 = arith.constant 8 : index
    %c0_19 = arith.constant 0 : index
    %21 = vector.load %arg9[%c8_18, %c0_19] : memref<224x128xf32, #tpu.memory_space<vmem>>, vector<8x128xf32>
    %22 = arith.maximumf %20, %21 : vector<8x128xf32>
    %c16 = arith.constant 16 : index
    %c0_20 = arith.constant 0 : index
    %23 = vector.load %arg10[%c16, %c0_20] : memref<112x640xf32, #tpu.memory_space<vmem>>, vector<8x128xf32>
    tpu.vector_store %arg10[%c16, %c0_20], %22 {strides = array<i32>} : memref<112x640xf32, #tpu.memory_space<vmem>>, vector<8x128xf32>,
    %c8_21 = arith.constant 8 : index
    %c128_22 = arith.constant 128 : index
    %24 = vector.load %arg10[%c8_21, %c128_22] : memref<112x640xf32, #tpu.memory_space<vmem>>, vector<8x128xf32>
    tpu.vector_store %arg10[%c8_21, %c128_22], %22 {strides = array<i32>} : memref<112x640xf32, #tpu.memory_space<vmem>>, vector<8x128xf32>,
    %c0_23 = arith.constant 0 : index
    %c256 = arith.constant 256 : index
    %25 = vector.load %arg10[%c0_23, %c256] : memref<112x640xf32, #tpu.memory_space<vmem>>, vector<8x128xf32>
    tpu.vector_store %arg10[%c0_23, %c256], %22 {strides = array<i32>} : memref<112x640xf32, #tpu.memory_space<vmem>>, vector<8x128xf32>,
    %c16_24 = arith.constant 16 : index
    %c0_25 = arith.constant 0 : index
    %26 = vector.load %arg9[%c16_24, %c0_25] : memref<224x128xf32, #tpu.memory_space<vmem>>, vector<8x128xf32>
    %c24 = arith.constant 24 : index
    %c0_26 = arith.constant 0 : index
    %27 = vector.load %arg9[%c24, %c0_26] : memref<224x128xf32, #tpu.memory_space<vmem>>, vector<8x128xf32>
    %28 = arith.maximumf %26, %27 : vector<8x128xf32>
    %c24_27 = arith.constant 24 : index
    %c0_28 = arith.constant 0 : index
    %29 = vector.load %arg10[%c24_27, %c0_28] : memref<112x640xf32, #tpu.memory_space<vmem>>, vector<8x128xf32>
    tpu.vector_store %arg10[%c24_27, %c0_28], %28 {strides = array<i32>} : memref<112x640xf32, #tpu.memory_space<vmem>>, vector<8x128xf32>,
    %c16_29 = arith.constant 16 : index
    %c128_30 = arith.constant 128 : index
    %30 = vector.load %arg10[%c16_29, %c128_30] : memref<112x640xf32, #tpu.memory_space<vmem>>, vector<8x128xf32>
    tpu.vector_store %arg10[%c16_29, %c128_30], %28 {strides = array<i32>} : memref<112x640xf32, #tpu.memory_space<vmem>>, vector<8x128xf32>,
    %c8_31 = arith.constant 8 : index
    %c256_32 = arith.constant 256 : index
    %31 = vector.load %arg10[%c8_31, %c256_32] : memref<112x640xf32, #tpu.memory_space<vmem>>, vector<8x128xf32>
    tpu.vector_store %arg10[%c8_31, %c256_32], %28 {strides = array<i32>} : memref<112x640xf32, #tpu.memory_space<vmem>>, vector<8x128xf32>,
    %c0_33 = arith.constant 0 : index
    %c384_34 = arith.constant 384 : index
    %32 = vector.load %arg10[%c0_33, %c384_34] : memref<112x640xf32, #tpu.memory_space<vmem>>, vector<8x128xf32>
    tpu.vector_store %arg10[%c0_33, %c384_34], %28 {strides = array<i32>} : memref<112x640xf32, #tpu.memory_space<vmem>>, vector<8x128xf32>,
    %c32 = arith.constant 32 : index
    %c0_35 = arith.constant 0 : index
    %33 = vector.load %arg9[%c32, %c0_35] : memref<224x128xf32, #tpu.memory_space<vmem>>, vector<8x128xf32>
    %c40 = arith.constant 40 : index
    %c0_36 = arith.constant 0 : index
    %34 = vector.load %arg9[%c40, %c0_36] : memref<224x128xf32, #tpu.memory_space<vmem>>, vector<8x128xf32>
    %35 = arith.maximumf %33, %34 : vector<8x128xf32>
    %c32_37 = arith.constant 32 : index
    %c0_38 = arith.constant 0 : index
    %36 = vector.load %arg10[%c32_37, %c0_38] : memref<112x640xf32, #tpu.memory_space<vmem>>, vector<8x128xf32>
    tpu.vector_store %arg10[%c32_37, %c0_38], %35 {strides = array<i32>} : memref<112x640xf32, #tpu.memory_space<vmem>>, vector<8x128xf32>,
    %c24_39 = arith.constant 24 : index
    %c128_40 = arith.constant 128 : index
    %37 = vector.load %arg10[%c24_39, %c128_40] : memref<112x640xf32, #tpu.memory_space<vmem>>, vector<8x128xf32>
    tpu.vector_store %arg10[%c24_39, %c128_40], %35 {strides = array<i32>} : memref<112x640xf32, #tpu.memory_space<vmem>>, vector<8x128xf32>,
    %c16_41 = arith.constant 16 : index
    %c256_42 = arith.constant 256 : index
    %38 = vector.load %arg10[%c16_41, %c256_42] : memref<112x640xf32, #tpu.memory_space<vmem>>, vector<8x128xf32>
    tpu.vector_store %arg10[%c16_41, %c256_42], %35 {strides = array<i32>} : memref<112x640xf32, #tpu.memory_space<vmem>>, vector<8x128xf32>,
    %c8_43 = arith.constant 8 : index
    %c384_44 = arith.constant 384 : index
    %39 = vector.load %arg10[%c8_43, %c384_44] : memref<112x640xf32, #tpu.memory_space<vmem>>, vector<8x128xf32>
    tpu.vector_store %arg10[%c8_43, %c384_44], %35 {strides = array<i32>} : memref<112x640xf32, #tpu.memory_space<vmem>>, vector<8x128xf32>,
    %c0_45 = arith.constant 0 : index
    %c512_46 = arith.constant 512 : index
    %40 = vector.load %arg10[%c0_45, %c512_46] : memref<112x640xf32, #tpu.memory_space<vmem>>, vector<8x128xf32>
    tpu.vector_store %arg10[%c0_45, %c512_46], %35 {strides = array<i32>} : memref<112x640xf32, #tpu.memory_space<vmem>>, vector<8x128xf32>,
    %c48 = arith.constant 48 : index
    %c0_47 = arith.constant 0 : index
    %41 = vector.load %arg9[%c48, %c0_47] : memref<224x128xf32, #tpu.memory_space<vmem>>, vector<8x128xf32>
    %c56 = arith.constant 56 : index
    %c0_48 = arith.constant 0 : index
    %42 = vector.load %arg9[%c56, %c0_48] : memref<224x128xf32, #tpu.memory_space<vmem>>, vector<8x128xf32>
    %43 = arith.maximumf %41, %42 : vector<8x128xf32>
    %c40_49 = arith.constant 40 : index
    %c0_50 = arith.constant 0 : index
    %44 = vector.load %arg10[%c40_49, %c0_50] : memref<112x640xf32, #tpu.memory_space<vmem>>, vector<8x128xf32>
    tpu.vector_store %arg10[%c40_49, %c0_50], %43 {strides = array<i32>} : memref<112x640xf32, #tpu.memory_space<vmem>>, vector<8x128xf32>,
    %c32_51 = arith.constant 32 : index
    %c128_52 = arith.constant 128 : index
    %45 = vector.load %arg10[%c32_51, %c128_52] : memref<112x640xf32, #tpu.memory_space<vmem>>, vector<8x128xf32>
    tpu.vector_store %arg10[%c32_51, %c128_52], %43 {strides = array<i32>} : memref<112x640xf32, #tpu.memory_space<vmem>>, vector<8x128xf32>,
    %c24_53 = arith.constant 24 : index
    %c256_54 = arith.constant 256 : index
    %46 = vector.load %arg10[%c24_53, %c256_54] : memref<112x640xf32, #tpu.memory_space<vmem>>, vector<8x128xf32>
    tpu.vector_store %arg10[%c24_53, %c256_54], %43 {strides = array<i32>} : memref<112x640xf32, #tpu.memory_space<vmem>>, vector<8x128xf32>,
    %c16_55 = arith.constant 16 : index
    %c384_56 = arith.constant 384 : index
    %47 = vector.load %arg10[%c16_55, %c384_56] : memref<112x640xf32, #tpu.memory_space<vmem>>, vector<8x128xf32>
    tpu.vector_store %arg10[%c16_55, %c384_56], %43 {strides = array<i32>} : memref<112x640xf32, #tpu.memory_space<vmem>>, vector<8x128xf32>,
    %c8_57 = arith.constant 8 : index
    %c512_58 = arith.constant 512 : index
    %48 = vector.load %arg10[%c8_57, %c512_58] : memref<112x640xf32, #tpu.memory_space<vmem>>, vector<8x128xf32>
    tpu.vector_store %arg10[%c8_57, %c512_58], %43 {strides = array<i32>} : memref<112x640xf32, #tpu.memory_space<vmem>>, vector<8x128xf32>,
    %c64 = arith.constant 64 : index
    %c0_59 = arith.constant 0 : index
    %49 = vector.load %arg9[%c64, %c0_59] : memref<224x128xf32, #tpu.memory_space<vmem>>, vector<8x128xf32>
    %c72 = arith.constant 72 : index
    %c0_60 = arith.constant 0 : index
    %50 = vector.load %arg9[%c72, %c0_60] : memref<224x128xf32, #tpu.memory_space<vmem>>, vector<8x128xf32>
    %51 = arith.maximumf %49, %50 : vector<8x128xf32>
    %c48_61 = arith.constant 48 : index
    %c0_62 = arith.constant 0 : index
    %52 = vector.load %arg10[%c48_61, %c0_62] : memref<112x640xf32, #tpu.memory_space<vmem>>, vector<8x128xf32>
    tpu.vector_store %arg10[%c48_61, %c0_62], %51 {strides = array<i32>} : memref<112x640xf32, #tpu.memory_space<vmem>>, vector<8x128xf32>,
    %c40_63 = arith.constant 40 : index
    %c128_64 = arith.constant 128 : index
    %53 = vector.load %arg10[%c40_63, %c128_64] : memref<112x640xf32, #tpu.memory_space<vmem>>, vector<8x128xf32>
    tpu.vector_store %arg10[%c40_63, %c128_64], %51 {strides = array<i32>} : memref<112x640xf32, #tpu.memory_space<vmem>>, vector<8x128xf32>,
    %c32_65 = arith.constant 32 : index
    %c256_66 = arith.constant 256 : index
    %54 = vector.load %arg10[%c32_65, %c256_66] : memref<112x640xf32, #tpu.memory_space<vmem>>, vector<8x128xf32>
    tpu.vector_store %arg10[%c32_65, %c256_66], %51 {strides = array<i32>} : memref<112x640xf32, #tpu.memory_space<vmem>>, vector<8x128xf32>,
    %c24_67 = arith.constant 24 : index
    %c384_68 = arith.constant 384 : index
    %55 = vector.load %arg10[%c24_67, %c384_68] : memref<112x640xf32, #tpu.memory_space<vmem>>, vector<8x128xf32>
    tpu.vector_store %arg10[%c24_67, %c384_68], %51 {strides = array<i32>} : memref<112x640xf32, #tpu.memory_space<vmem>>, vector<8x128xf32>,
    %c16_69 = arith.constant 16 : index
    %c512_70 = arith.constant 512 : index
    %56 = vector.load %arg10[%c16_69, %c512_70] : memref<112x640xf32, #tpu.memory_space<vmem>>, vector<8x128xf32>
    tpu.vector_store %arg10[%c16_69, %c512_70], %51 {strides = array<i32>} : memref<112x640xf32, #tpu.memory_space<vmem>>, vector<8x128xf32>,
    %c80 = arith.constant 80 : index
    %c0_71 = arith.constant 0 : index
    %57 = vector.load %arg9[%c80, %c0_71] : memref<224x128xf32, #tpu.memory_space<vmem>>, vector<8x128xf32>
    %c88 = arith.constant 88 : index
    %c0_72 = arith.constant 0 : index
    %58 = vector.load %arg9[%c88, %c0_72] : memref<224x128xf32, #tpu.memory_space<vmem>>, vector<8x128xf32>
    %59 = arith.maximumf %57, %58 : vector<8x128xf32>
    %c56_73 = arith.constant 56 : index
    %c0_74 = arith.constant 0 : index
    %60 = vector.load %arg10[%c56_73, %c0_74] : memref<112x640xf32, #tpu.memory_space<vmem>>, vector<8x128xf32>
    tpu.vector_store %arg10[%c56_73, %c0_74], %59 {strides = array<i32>} : memref<112x640xf32, #tpu.memory_space<vmem>>, vector<8x128xf32>,
    %c48_75 = arith.constant 48 : index
    %c128_76 = arith.constant 128 : index
    %61 = vector.load %arg10[%c48_75, %c128_76] : memref<112x640xf32, #tpu.memory_space<vmem>>, vector<8x128xf32>
    tpu.vector_store %arg10[%c48_75, %c128_76], %59 {strides = array<i32>} : memref<112x640xf32, #tpu.memory_space<vmem>>, vector<8x128xf32>,
    %c40_77 = arith.constant 40 : index
    %c256_78 = arith.constant 256 : index
    %62 = vector.load %arg10[%c40_77, %c256_78] : memref<112x640xf32, #tpu.memory_space<vmem>>, vector<8x128xf32>
    tpu.vector_store %arg10[%c40_77, %c256_78], %59 {strides = array<i32>} : memref<112x640xf32, #tpu.memory_space<vmem>>, vector<8x128xf32>,
    %c32_79 = arith.constant 32 : index
    %c384_80 = arith.constant 384 : index
    %63 = vector.load %arg10[%c32_79, %c384_80] : memref<112x640xf32, #tpu.memory_space<vmem>>, vector<8x128xf32>
    tpu.vector_store %arg10[%c32_79, %c384_80], %59 {strides = array<i32>} : memref<112x640xf32, #tpu.memory_space<vmem>>, vector<8x128xf32>,
    %c24_81 = arith.constant 24 : index
    %c512_82 = arith.constant 512 : index
    %64 = vector.load %arg10[%c24_81, %c512_82] : memref<112x640xf32, #tpu.memory_space<vmem>>, vector<8x128xf32>
    tpu.vector_store %arg10[%c24_81, %c512_82], %59 {strides = array<i32>} : memref<112x640xf32, #tpu.memory_space<vmem>>, vector<8x128xf32>,
    %c96_83 = arith.constant 96 : index
    %c0_84 = arith.constant 0 : index
    %65 = vector.load %arg9[%c96_83, %c0_84] : memref<224x128xf32, #tpu.memory_space<vmem>>, vector<8x128xf32>
    %c104_85 = arith.constant 104 : index
    %c0_86 = arith.constant 0 : index
    %66 = vector.load %arg9[%c104_85, %c0_86] : memref<224x128xf32, #tpu.memory_space<vmem>>, vector<8x128xf32>
    %67 = arith.maximumf %65, %66 : vector<8x128xf32>
    %c64_87 = arith.constant 64 : index
    %c0_88 = arith.constant 0 : index
    %68 = vector.load %arg10[%c64_87, %c0_88] : memref<112x640xf32, #tpu.memory_space<vmem>>, vector<8x128xf32>
    tpu.vector_store %arg10[%c64_87, %c0_88], %67 {strides = array<i32>} : memref<112x640xf32, #tpu.memory_space<vmem>>, vector<8x128xf32>,
    %c56_89 = arith.constant 56 : index
    %c128_90 = arith.constant 128 : index
    %69 = vector.load %arg10[%c56_89, %c128_90] : memref<112x640xf32, #tpu.memory_space<vmem>>, vector<8x128xf32>
    tpu.vector_store %arg10[%c56_89, %c128_90], %67 {strides = array<i32>} : memref<112x640xf32, #tpu.memory_space<vmem>>, vector<8x128xf32>,
    %c48_91 = arith.constant 48 : index
    %c256_92 = arith.constant 256 : index
    %70 = vector.load %arg10[%c48_91, %c256_92] : memref<112x640xf32, #tpu.memory_space<vmem>>, vector<8x128xf32>
    tpu.vector_store %arg10[%c48_91, %c256_92], %67 {strides = array<i32>} : memref<112x640xf32, #tpu.memory_space<vmem>>, vector<8x128xf32>,
    %c40_93 = arith.constant 40 : index
    %c384_94 = arith.constant 384 : index
    %71 = vector.load %arg10[%c40_93, %c384_94] : memref<112x640xf32, #tpu.memory_space<vmem>>, vector<8x128xf32>
    tpu.vector_store %arg10[%c40_93, %c384_94], %67 {strides = array<i32>} : memref<112x640xf32, #tpu.memory_space<vmem>>, vector<8x128xf32>,
    %c32_95 = arith.constant 32 : index
    %c512_96 = arith.constant 512 : index
    %72 = vector.load %arg10[%c32_95, %c512_96] : memref<112x640xf32, #tpu.memory_space<vmem>>, vector<8x128xf32>
    tpu.vector_store %arg10[%c32_95, %c512_96], %67 {strides = array<i32>} : memref<112x640xf32, #tpu.memory_space<vmem>>, vector<8x128xf32>,
    %c112 = arith.constant 112 : index
    %c0_97 = arith.constant 0 : index
    %73 = vector.load %arg9[%c112, %c0_97] : memref<224x128xf32, #tpu.memory_space<vmem>>, vector<8x128xf32>
    %c120 = arith.constant 120 : index
    %c0_98 = arith.constant 0 : index
    %74 = vector.load %arg9[%c120, %c0_98] : memref<224x128xf32, #tpu.memory_space<vmem>>, vector<8x128xf32>
    %75 = arith.maximumf %73, %74 : vector<8x128xf32>
    %c72_99 = arith.constant 72 : index
    %c0_100 = arith.constant 0 : index
    %76 = vector.load %arg10[%c72_99, %c0_100] : memref<112x640xf32, #tpu.memory_space<vmem>>, vector<8x128xf32>
    tpu.vector_store %arg10[%c72_99, %c0_100], %75 {strides = array<i32>} : memref<112x640xf32, #tpu.memory_space<vmem>>, vector<8x128xf32>,
    %c64_101 = arith.constant 64 : index
    %c128_102 = arith.constant 128 : index
    %77 = vector.load %arg10[%c64_101, %c128_102] : memref<112x640xf32, #tpu.memory_space<vmem>>, vector<8x128xf32>
    tpu.vector_store %arg10[%c64_101, %c128_102], %75 {strides = array<i32>} : memref<112x640xf32, #tpu.memory_space<vmem>>, vector<8x128xf32>,
    %c56_103 = arith.constant 56 : index
    %c256_104 = arith.constant 256 : index
    %78 = vector.load %arg10[%c56_103, %c256_104] : memref<112x640xf32, #tpu.memory_space<vmem>>, vector<8x128xf32>
    tpu.vector_store %arg10[%c56_103, %c256_104], %75 {strides = array<i32>} : memref<112x640xf32, #tpu.memory_space<vmem>>, vector<8x128xf32>,
    %c48_105 = arith.constant 48 : index
    %c384_106 = arith.constant 384 : index
    %79 = vector.load %arg10[%c48_105, %c384_106] : memref<112x640xf32, #tpu.memory_space<vmem>>, vector<8x128xf32>
    tpu.vector_store %arg10[%c48_105, %c384_106], %75 {strides = array<i32>} : memref<112x640xf32, #tpu.memory_space<vmem>>, vector<8x128xf32>,
    %c40_107 = arith.constant 40 : index
    %c512_108 = arith.constant 512 : index
    %80 = vector.load %arg10[%c40_107, %c512_108] : memref<112x640xf32, #tpu.memory_space<vmem>>, vector<8x128xf32>
    tpu.vector_store %arg10[%c40_107, %c512_108], %75 {strides = array<i32>} : memref<112x640xf32, #tpu.memory_space<vmem>>, vector<8x128xf32>,
    %c128_109 = arith.constant 128 : index
    %c0_110 = arith.constant 0 : index
    %81 = vector.load %arg9[%c128_109, %c0_110] : memref<224x128xf32, #tpu.memory_space<vmem>>, vector<8x128xf32>
    %c136 = arith.constant 136 : index
    %c0_111 = arith.constant 0 : index
    %82 = vector.load %arg9[%c136, %c0_111] : memref<224x128xf32, #tpu.memory_space<vmem>>, vector<8x128xf32>
    %83 = arith.maximumf %81, %82 : vector<8x128xf32>
    %c80_112 = arith.constant 80 : index
    %c0_113 = arith.constant 0 : index
    %84 = vector.load %arg10[%c80_112, %c0_113] : memref<112x640xf32, #tpu.memory_space<vmem>>, vector<8x128xf32>
    tpu.vector_store %arg10[%c80_112, %c0_113], %83 {strides = array<i32>} : memref<112x640xf32, #tpu.memory_space<vmem>>, vector<8x128xf32>,
    %c72_114 = arith.constant 72 : index
    %c128_115 = arith.constant 128 : index
    %85 = vector.load %arg10[%c72_114, %c128_115] : memref<112x640xf32, #tpu.memory_space<vmem>>, vector<8x128xf32>
    tpu.vector_store %arg10[%c72_114, %c128_115], %83 {strides = array<i32>} : memref<112x640xf32, #tpu.memory_space<vmem>>, vector<8x128xf32>,
    %c64_116 = arith.constant 64 : index
    %c256_117 = arith.constant 256 : index
    %86 = vector.load %arg10[%c64_116, %c256_117] : memref<112x640xf32, #tpu.memory_space<vmem>>, vector<8x128xf32>
    tpu.vector_store %arg10[%c64_116, %c256_117], %83 {strides = array<i32>} : memref<112x640xf32, #tpu.memory_space<vmem>>, vector<8x128xf32>,
    %c56_118 = arith.constant 56 : index
    %c384_119 = arith.constant 384 : index
    %87 = vector.load %arg10[%c56_118, %c384_119] : memref<112x640xf32, #tpu.memory_space<vmem>>, vector<8x128xf32>
    tpu.vector_store %arg10[%c56_118, %c384_119], %83 {strides = array<i32>} : memref<112x640xf32, #tpu.memory_space<vmem>>, vector<8x128xf32>,
    %c48_120 = arith.constant 48 : index
    %c512_121 = arith.constant 512 : index
    %88 = vector.load %arg10[%c48_120, %c512_121] : memref<112x640xf32, #tpu.memory_space<vmem>>, vector<8x128xf32>
    tpu.vector_store %arg10[%c48_120, %c512_121], %83 {strides = array<i32>} : memref<112x640xf32, #tpu.memory_space<vmem>>, vector<8x128xf32>,
    %c144 = arith.constant 144 : index
    %c0_122 = arith.constant 0 : index
    %89 = vector.load %arg9[%c144, %c0_122] : memref<224x128xf32, #tpu.memory_space<vmem>>, vector<8x128xf32>
    %c152 = arith.constant 152 : index
    %c0_123 = arith.constant 0 : index
    %90 = vector.load %arg9[%c152, %c0_123] : memref<224x128xf32, #tpu.memory_space<vmem>>, vector<8x128xf32>
    %91 = arith.maximumf %89, %90 : vector<8x128xf32>
    %c88_124 = arith.constant 88 : index
    %c0_125 = arith.constant 0 : index
    %92 = vector.load %arg10[%c88_124, %c0_125] : memref<112x640xf32, #tpu.memory_space<vmem>>, vector<8x128xf32>
    tpu.vector_store %arg10[%c88_124, %c0_125], %91 {strides = array<i32>} : memref<112x640xf32, #tpu.memory_space<vmem>>, vector<8x128xf32>,
    %c80_126 = arith.constant 80 : index
    %c128_127 = arith.constant 128 : index
    %93 = vector.load %arg10[%c80_126, %c128_127] : memref<112x640xf32, #tpu.memory_space<vmem>>, vector<8x128xf32>
    tpu.vector_store %arg10[%c80_126, %c128_127], %91 {strides = array<i32>} : memref<112x640xf32, #tpu.memory_space<vmem>>, vector<8x128xf32>,
    %c72_128 = arith.constant 72 : index
    %c256_129 = arith.constant 256 : index
    %94 = vector.load %arg10[%c72_128, %c256_129] : memref<112x640xf32, #tpu.memory_space<vmem>>, vector<8x128xf32>
    tpu.vector_store %arg10[%c72_128, %c256_129], %91 {strides = array<i32>} : memref<112x640xf32, #tpu.memory_space<vmem>>, vector<8x128xf32>,
    %c64_130 = arith.constant 64 : index
    %c384_131 = arith.constant 384 : index
    %95 = vector.load %arg10[%c64_130, %c384_131] : memref<112x640xf32, #tpu.memory_space<vmem>>, vector<8x128xf32>
    tpu.vector_store %arg10[%c64_130, %c384_131], %91 {strides = array<i32>} : memref<112x640xf32, #tpu.memory_space<vmem>>, vector<8x128xf32>,
    %c56_132 = arith.constant 56 : index
    %c512_133 = arith.constant 512 : index
    %96 = vector.load %arg10[%c56_132, %c512_133] : memref<112x640xf32, #tpu.memory_space<vmem>>, vector<8x128xf32>
    tpu.vector_store %arg10[%c56_132, %c512_133], %91 {strides = array<i32>} : memref<112x640xf32, #tpu.memory_space<vmem>>, vector<8x128xf32>,
    %c160 = arith.constant 160 : index
    %c0_134 = arith.constant 0 : index
    %97 = vector.load %arg9[%c160, %c0_134] : memref<224x128xf32, #tpu.memory_space<vmem>>, vector<8x128xf32>
    %c168 = arith.constant 168 : index
    %c0_135 = arith.constant 0 : index
    %98 = vector.load %arg9[%c168, %c0_135] : memref<224x128xf32, #tpu.memory_space<vmem>>, vector<8x128xf32>
    %99 = arith.maximumf %97, %98 : vector<8x128xf32>
    %c96_136 = arith.constant 96 : index
    %c0_137 = arith.constant 0 : index
    %100 = vector.load %arg10[%c96_136, %c0_137] : memref<112x640xf32, #tpu.memory_space<vmem>>, vector<8x128xf32>
    tpu.vector_store %arg10[%c96_136, %c0_137], %99 {strides = array<i32>} : memref<112x640xf32, #tpu.memory_space<vmem>>, vector<8x128xf32>,
    %c88_138 = arith.constant 88 : index
    %c128_139 = arith.constant 128 : index
    %101 = vector.load %arg10[%c88_138, %c128_139] : memref<112x640xf32, #tpu.memory_space<vmem>>, vector<8x128xf32>
    tpu.vector_store %arg10[%c88_138, %c128_139], %99 {strides = array<i32>} : memref<112x640xf32, #tpu.memory_space<vmem>>, vector<8x128xf32>,
    %c80_140 = arith.constant 80 : index
    %c256_141 = arith.constant 256 : index
    %102 = vector.load %arg10[%c80_140, %c256_141] : memref<112x640xf32, #tpu.memory_space<vmem>>, vector<8x128xf32>
    tpu.vector_store %arg10[%c80_140, %c256_141], %99 {strides = array<i32>} : memref<112x640xf32, #tpu.memory_space<vmem>>, vector<8x128xf32>,
    %c72_142 = arith.constant 72 : index
    %c384_143 = arith.constant 384 : index
    %103 = vector.load %arg10[%c72_142, %c384_143] : memref<112x640xf32, #tpu.memory_space<vmem>>, vector<8x128xf32>
    tpu.vector_store %arg10[%c72_142, %c384_143], %99 {strides = array<i32>} : memref<112x640xf32, #tpu.memory_space<vmem>>, vector<8x128xf32>,
    %c64_144 = arith.constant 64 : index
    %c512_145 = arith.constant 512 : index
    %104 = vector.load %arg10[%c64_144, %c512_145] : memref<112x640xf32, #tpu.memory_space<vmem>>, vector<8x128xf32>
    tpu.vector_store %arg10[%c64_144, %c512_145], %99 {strides = array<i32>} : memref<112x640xf32, #tpu.memory_space<vmem>>, vector<8x128xf32>,
    %c176 = arith.constant 176 : index
    %c0_146 = arith.constant 0 : index
    %105 = vector.load %arg9[%c176, %c0_146] : memref<224x128xf32, #tpu.memory_space<vmem>>, vector<8x128xf32>
    %c184 = arith.constant 184 : index
    %c0_147 = arith.constant 0 : index
    %106 = vector.load %arg9[%c184, %c0_147] : memref<224x128xf32, #tpu.memory_space<vmem>>, vector<8x128xf32>
    %107 = arith.maximumf %105, %106 : vector<8x128xf32>
    %c104_148 = arith.constant 104 : index
    %c0_149 = arith.constant 0 : index
    %108 = vector.load %arg10[%c104_148, %c0_149] : memref<112x640xf32, #tpu.memory_space<vmem>>, vector<8x128xf32>
    tpu.vector_store %arg10[%c104_148, %c0_149], %107 {strides = array<i32>} : memref<112x640xf32, #tpu.memory_space<vmem>>, vector<8x128xf32>,
    %c96_150 = arith.constant 96 : index
    %c128_151 = arith.constant 128 : index
    %109 = vector.load %arg10[%c96_150, %c128_151] : memref<112x640xf32, #tpu.memory_space<vmem>>, vector<8x128xf32>
    tpu.vector_store %arg10[%c96_150, %c128_151], %107 {strides = array<i32>} : memref<112x640xf32, #tpu.memory_space<vmem>>, vector<8x128xf32>,
    %c88_152 = arith.constant 88 : index
    %c256_153 = arith.constant 256 : index
    %110 = vector.load %arg10[%c88_152, %c256_153] : memref<112x640xf32, #tpu.memory_space<vmem>>, vector<8x128xf32>
    tpu.vector_store %arg10[%c88_152, %c256_153], %107 {strides = array<i32>} : memref<112x640xf32, #tpu.memory_space<vmem>>, vector<8x128xf32>,
    %c80_154 = arith.constant 80 : index
    %c384_155 = arith.constant 384 : index
    %111 = vector.load %arg10[%c80_154, %c384_155] : memref<112x640xf32, #tpu.memory_space<vmem>>, vector<8x128xf32>
    tpu.vector_store %arg10[%c80_154, %c384_155], %107 {strides = array<i32>} : memref<112x640xf32, #tpu.memory_space<vmem>>, vector<8x128xf32>,
    %c72_156 = arith.constant 72 : index
    %c512_157 = arith.constant 512 : index
    %112 = vector.load %arg10[%c72_156, %c512_157] : memref<112x640xf32, #tpu.memory_space<vmem>>, vector<8x128xf32>
    tpu.vector_store %arg10[%c72_156, %c512_157], %107 {strides = array<i32>} : memref<112x640xf32, #tpu.memory_space<vmem>>, vector<8x128xf32>,
    %c192 = arith.constant 192 : index
    %c0_158 = arith.constant 0 : index
    %113 = vector.load %arg9[%c192, %c0_158] : memref<224x128xf32, #tpu.memory_space<vmem>>, vector<8x128xf32>
    %c200 = arith.constant 200 : index
    %c0_159 = arith.constant 0 : index
    %114 = vector.load %arg9[%c200, %c0_159] : memref<224x128xf32, #tpu.memory_space<vmem>>, vector<8x128xf32>
    %115 = arith.maximumf %113, %114 : vector<8x128xf32>
    %c104_160 = arith.constant 104 : index
    %c128_161 = arith.constant 128 : index
    %116 = vector.load %arg10[%c104_160, %c128_161] : memref<112x640xf32, #tpu.memory_space<vmem>>, vector<8x128xf32>
    tpu.vector_store %arg10[%c104_160, %c128_161], %115 {strides = array<i32>} : memref<112x640xf32, #tpu.memory_space<vmem>>, vector<8x128xf32>,
    %c96_162 = arith.constant 96 : index
    %c256_163 = arith.constant 256 : index
    %117 = vector.load %arg10[%c96_162, %c256_163] : memref<112x640xf32, #tpu.memory_space<vmem>>, vector<8x128xf32>
    tpu.vector_store %arg10[%c96_162, %c256_163], %115 {strides = array<i32>} : memref<112x640xf32, #tpu.memory_space<vmem>>, vector<8x128xf32>,
    %c88_164 = arith.constant 88 : index
    %c384_165 = arith.constant 384 : index
    %118 = vector.load %arg10[%c88_164, %c384_165] : memref<112x640xf32, #tpu.memory_space<vmem>>, vector<8x128xf32>
    tpu.vector_store %arg10[%c88_164, %c384_165], %115 {strides = array<i32>} : memref<112x640xf32, #tpu.memory_space<vmem>>, vector<8x128xf32>,
    %c80_166 = arith.constant 80 : index
    %c512_167 = arith.constant 512 : index
    %119 = vector.load %arg10[%c80_166, %c512_167] : memref<112x640xf32, #tpu.memory_space<vmem>>, vector<8x128xf32>
    tpu.vector_store %arg10[%c80_166, %c512_167], %115 {strides = array<i32>} : memref<112x640xf32, #tpu.memory_space<vmem>>, vector<8x128xf32>,
    %c208 = arith.constant 208 : index
    %c0_168 = arith.constant 0 : index
    %120 = vector.load %arg9[%c208, %c0_168] : memref<224x128xf32, #tpu.memory_space<vmem>>, vector<8x128xf32>
    %c216 = arith.constant 216 : index
    %c0_169 = arith.constant 0 : index
    %121 = vector.load %arg9[%c216, %c0_169] : memref<224x128xf32, #tpu.memory_space<vmem>>, vector<8x128xf32>
    %122 = arith.maximumf %120, %121 : vector<8x128xf32>
    %c104_170 = arith.constant 104 : index
    %c256_171 = arith.constant 256 : index
    %123 = vector.load %arg10[%c104_170, %c256_171] : memref<112x640xf32, #tpu.memory_space<vmem>>, vector<8x128xf32>
    tpu.vector_store %arg10[%c104_170, %c256_171], %122 {strides = array<i32>} : memref<112x640xf32, #tpu.memory_space<vmem>>, vector<8x128xf32>,
    %c96_172 = arith.constant 96 : index
    %c384_173 = arith.constant 384 : index
    %124 = vector.load %arg10[%c96_172, %c384_173] : memref<112x640xf32, #tpu.memory_space<vmem>>, vector<8x128xf32>
    tpu.vector_store %arg10[%c96_172, %c384_173], %122 {strides = array<i32>} : memref<112x640xf32, #tpu.memory_space<vmem>>, vector<8x128xf32>,
    %c88_174 = arith.constant 88 : index
    %c512_175 = arith.constant 512 : index
    %125 = vector.load %arg10[%c88_174, %c512_175] : memref<112x640xf32, #tpu.memory_space<vmem>>, vector<8x128xf32>
    tpu.vector_store %arg10[%c88_174, %c512_175], %122 {strides = array<i32>} : memref<112x640xf32, #tpu.memory_space<vmem>>, vector<8x128xf32>,
    %c0_176 = arith.constant 0 : index
    %c0_177 = arith.constant 0 : index
    %126 = vector.load %arg10[%c0_176, %c0_177] : memref<112x640xf32, #tpu.memory_space<vmem>>, vector<112x640xf32>
    %c0_178 = arith.constant 0 : index
    %c0_179 = arith.constant 0 : index
    %127 = vector.load %arg4[%c0_178, %c0_179] : memref<640x256xf32, #tpu.memory_space<vmem>>, vector<640x256xf32>
    %cst_180 = arith.constant dense<0.000000e+00> : vector<112x256xf32>
    %128 = tpu.matmul %126, %127, %cst_180 {dimension_numbers = #tpu.dot_dimension_numbers<[1], [0], [0], [1], [0, 0, 1, 1], [], []>} : vector<112x640xf32>, vector<640x256xf32>, vector<112x256xf32> -> vector<112x256xf32>
    %c0_181 = arith.constant 0 : index
    %c0_182 = arith.constant 0 : index
    %129 = vector.load %arg5[%c0_181, %c0_182] : memref<1x256xf32, #tpu.memory_space<vmem>>, vector<1x256xf32>
    %130 = vector.broadcast %129 : vector<1x256xf32> to vector<112x256xf32>
    %131 = arith.addf %128, %130 : vector<112x256xf32>
    %cst_183 = arith.constant 0.000000e+00 : f32
    %132 = vector.broadcast %cst_183 : f32 to vector<112x256xf32>
    %133 = arith.maximumf %131, %132 : vector<112x256xf32>
    %134 = vector.extract_strided_slice %133 {offsets = [0, 0], sizes = [112, 128], strides = [1, 1]} : vector<112x256xf32> to vector<112x128xf32>
    %135 = vector.extract_strided_slice %133 {offsets = [0, 128], sizes = [112, 128], strides = [1, 1]} : vector<112x256xf32> to vector<112x128xf32>
    %136 = arith.maximumf %134, %135 : vector<112x128xf32>
    %c0_184 = arith.constant 0 : index
    %c0_185 = arith.constant 0 : index
    %137 = vector.load %arg11[%c0_184, %c0_185] : memref<112x128xf32, #tpu.memory_space<vmem>>, vector<112x128xf32>
    tpu.vector_store %arg11[%c0_184, %c0_185], %136 {strides = array<i32>} : memref<112x128xf32, #tpu.memory_space<vmem>>, vector<112x128xf32>,
    %c0_186 = arith.constant 0 : index
    %c0_187 = arith.constant 0 : index
    %138 = vector.load %arg11[%c0_186, %c0_187] : memref<112x128xf32, #tpu.memory_space<vmem>>, vector<8x128xf32>
    %c8_188 = arith.constant 8 : index
    %c0_189 = arith.constant 0 : index
    %139 = vector.load %arg11[%c8_188, %c0_189] : memref<112x128xf32, #tpu.memory_space<vmem>>, vector<8x128xf32>
    %140 = arith.maximumf %138, %139 : vector<8x128xf32>
    %c0_190 = arith.constant 0 : index
    %c0_191 = arith.constant 0 : index
    %141 = vector.load %arg12[%c0_190, %c0_191] : memref<8x896xf32, #tpu.memory_space<vmem>>, vector<8x128xf32>
    tpu.vector_store %arg12[%c0_190, %c0_191], %140 {strides = array<i32>} : memref<8x896xf32, #tpu.memory_space<vmem>>, vector<8x128xf32>,
    %c16_192 = arith.constant 16 : index
    %c0_193 = arith.constant 0 : index
    %142 = vector.load %arg11[%c16_192, %c0_193] : memref<112x128xf32, #tpu.memory_space<vmem>>, vector<8x128xf32>
    %c24_194 = arith.constant 24 : index
    %c0_195 = arith.constant 0 : index
    %143 = vector.load %arg11[%c24_194, %c0_195] : memref<112x128xf32, #tpu.memory_space<vmem>>, vector<8x128xf32>
    %144 = arith.maximumf %142, %143 : vector<8x128xf32>
    %c0_196 = arith.constant 0 : index
    %c128_197 = arith.constant 128 : index
    %145 = vector.load %arg12[%c0_196, %c128_197] : memref<8x896xf32, #tpu.memory_space<vmem>>, vector<8x128xf32>
    tpu.vector_store %arg12[%c0_196, %c128_197], %144 {strides = array<i32>} : memref<8x896xf32, #tpu.memory_space<vmem>>, vector<8x128xf32>,
    %c32_198 = arith.constant 32 : index
    %c0_199 = arith.constant 0 : index
    %146 = vector.load %arg11[%c32_198, %c0_199] : memref<112x128xf32, #tpu.memory_space<vmem>>, vector<8x128xf32>
    %c40_200 = arith.constant 40 : index
    %c0_201 = arith.constant 0 : index
    %147 = vector.load %arg11[%c40_200, %c0_201] : memref<112x128xf32, #tpu.memory_space<vmem>>, vector<8x128xf32>
    %148 = arith.maximumf %146, %147 : vector<8x128xf32>
    %c0_202 = arith.constant 0 : index
    %c256_203 = arith.constant 256 : index
    %149 = vector.load %arg12[%c0_202, %c256_203] : memref<8x896xf32, #tpu.memory_space<vmem>>, vector<8x128xf32>
    tpu.vector_store %arg12[%c0_202, %c256_203], %148 {strides = array<i32>} : memref<8x896xf32, #tpu.memory_space<vmem>>, vector<8x128xf32>,
    %c48_204 = arith.constant 48 : index
    %c0_205 = arith.constant 0 : index
    %150 = vector.load %arg11[%c48_204, %c0_205] : memref<112x128xf32, #tpu.memory_space<vmem>>, vector<8x128xf32>
    %c56_206 = arith.constant 56 : index
    %c0_207 = arith.constant 0 : index
    %151 = vector.load %arg11[%c56_206, %c0_207] : memref<112x128xf32, #tpu.memory_space<vmem>>, vector<8x128xf32>
    %152 = arith.maximumf %150, %151 : vector<8x128xf32>
    %c0_208 = arith.constant 0 : index
    %c384_209 = arith.constant 384 : index
    %153 = vector.load %arg12[%c0_208, %c384_209] : memref<8x896xf32, #tpu.memory_space<vmem>>, vector<8x128xf32>
    tpu.vector_store %arg12[%c0_208, %c384_209], %152 {strides = array<i32>} : memref<8x896xf32, #tpu.memory_space<vmem>>, vector<8x128xf32>,
    %c64_210 = arith.constant 64 : index
    %c0_211 = arith.constant 0 : index
    %154 = vector.load %arg11[%c64_210, %c0_211] : memref<112x128xf32, #tpu.memory_space<vmem>>, vector<8x128xf32>
    %c72_212 = arith.constant 72 : index
    %c0_213 = arith.constant 0 : index
    %155 = vector.load %arg11[%c72_212, %c0_213] : memref<112x128xf32, #tpu.memory_space<vmem>>, vector<8x128xf32>
    %156 = arith.maximumf %154, %155 : vector<8x128xf32>
    %c0_214 = arith.constant 0 : index
    %c512_215 = arith.constant 512 : index
    %157 = vector.load %arg12[%c0_214, %c512_215] : memref<8x896xf32, #tpu.memory_space<vmem>>, vector<8x128xf32>
    tpu.vector_store %arg12[%c0_214, %c512_215], %156 {strides = array<i32>} : memref<8x896xf32, #tpu.memory_space<vmem>>, vector<8x128xf32>,
    %c80_216 = arith.constant 80 : index
    %c0_217 = arith.constant 0 : index
    %158 = vector.load %arg11[%c80_216, %c0_217] : memref<112x128xf32, #tpu.memory_space<vmem>>, vector<8x128xf32>
    %c88_218 = arith.constant 88 : index
    %c0_219 = arith.constant 0 : index
    %159 = vector.load %arg11[%c88_218, %c0_219] : memref<112x128xf32, #tpu.memory_space<vmem>>, vector<8x128xf32>
    %160 = arith.maximumf %158, %159 : vector<8x128xf32>
    %c0_220 = arith.constant 0 : index
    %c640 = arith.constant 640 : index
    %161 = vector.load %arg12[%c0_220, %c640] : memref<8x896xf32, #tpu.memory_space<vmem>>, vector<8x128xf32>
    tpu.vector_store %arg12[%c0_220, %c640], %160 {strides = array<i32>} : memref<8x896xf32, #tpu.memory_space<vmem>>, vector<8x128xf32>,
    %c96_221 = arith.constant 96 : index
    %c0_222 = arith.constant 0 : index
    %162 = vector.load %arg11[%c96_221, %c0_222] : memref<112x128xf32, #tpu.memory_space<vmem>>, vector<8x128xf32>
    %c104_223 = arith.constant 104 : index
    %c0_224 = arith.constant 0 : index
    %163 = vector.load %arg11[%c104_223, %c0_224] : memref<112x128xf32, #tpu.memory_space<vmem>>, vector<8x128xf32>
    %164 = arith.maximumf %162, %163 : vector<8x128xf32>
    %c0_225 = arith.constant 0 : index
    %c768 = arith.constant 768 : index
    %165 = vector.load %arg12[%c0_225, %c768] : memref<8x896xf32, #tpu.memory_space<vmem>>, vector<8x128xf32>
    tpu.vector_store %arg12[%c0_225, %c768], %164 {strides = array<i32>} : memref<8x896xf32, #tpu.memory_space<vmem>>, vector<8x128xf32>,
    %c0_226 = arith.constant 0 : index
    %c0_227 = arith.constant 0 : index
    %166 = vector.load %arg12[%c0_226, %c0_227] : memref<8x896xf32, #tpu.memory_space<vmem>>, vector<8x896xf32>
    %c0_228 = arith.constant 0 : index
    %c0_229 = arith.constant 0 : index
    %167 = vector.load %arg6[%c0_228, %c0_229] : memref<896x128xf32, #tpu.memory_space<vmem>>, vector<896x128xf32>
    %cst_230 = arith.constant dense<0.000000e+00> : vector<8x128xf32>
    %168 = tpu.matmul %166, %167, %cst_230 {dimension_numbers = #tpu.dot_dimension_numbers<[1], [0], [0], [1], [0, 0, 1, 1], [], []>} : vector<8x896xf32>, vector<896x128xf32>, vector<8x128xf32> -> vector<8x128xf32>
    %c0_231 = arith.constant 0 : index
    %c0_232 = arith.constant 0 : index
    %169 = vector.load %arg7[%c0_231, %c0_232] : memref<1x128xf32, #tpu.memory_space<vmem>>, vector<1x128xf32>
    %170 = vector.broadcast %169 : vector<1x128xf32> to vector<8x128xf32>
    %171 = arith.addf %168, %170 : vector<8x128xf32>
    %172 = tpu.iota {dimensions = array<i32: 1>} : vector<8x128xi32>
    %c10_i32 = arith.constant 10 : i32
    %173 = vector.broadcast %c10_i32 : i32 to vector<8x128xi32>
    %174 = arith.cmpi slt, %172, %173 : vector<8x128xi32>
    %cst_233 = arith.constant 0xFF800000 : f32
    %175 = vector.broadcast %cst_233 : f32 to vector<8x128xf32>
    %176 = arith.select %174, %171, %175 : vector<8x128xi1>, vector<8x128xf32>
    %cst_234 = arith.constant dense<0xFF800000> : vector<8xf32>
    %177 = vector.multi_reduction <maximumf>, %176, %cst_234 [1] : vector<8x128xf32> to vector<8xf32>
    %178 = vector.shape_cast %177 : vector<8xf32> to vector<8x1xf32>
    %179 = vector.broadcast %178 : vector<8x1xf32> to vector<8x128xf32>
    %180 = arith.subf %176, %179 : vector<8x128xf32>
    %181 = math.exp %180 : vector<8x128xf32>
    %cst_235 = arith.constant dense<0.000000e+00> : vector<8xf32>
    %182 = vector.multi_reduction <add>, %181, %cst_235 [1] : vector<8x128xf32> to vector<8xf32>
    %183 = vector.shape_cast %182 : vector<8xf32> to vector<8x1xf32>
    %184 = math.log %183 : vector<8x1xf32>
    %185 = vector.broadcast %184 : vector<8x1xf32> to vector<8x128xf32>
    %186 = arith.subf %180, %185 : vector<8x128xf32>
    %cst_236 = arith.constant 0.000000e+00 : f32
    %187 = vector.broadcast %cst_236 : f32 to vector<8x128xf32>
    %188 = arith.select %174, %186, %187 : vector<8x128xi1>, vector<8x128xf32>
    %c0_237 = arith.constant 0 : index
    %c0_238 = arith.constant 0 : index
    %189 = vector.load %arg8[%c0_237, %c0_238] : memref<8x128xf32, #tpu.memory_space<vmem>>, vector<8x128xf32>
    tpu.vector_store %arg8[%c0_237, %c0_238], %188 {strides = array<i32>} : memref<8x128xf32, #tpu.memory_space<vmem>>, vector<8x128xf32>,
    return
  }
  func.func @transform_0(%arg0: i32) -> (i32, i32, i32) {
    %c0_i32 = arith.constant 0 : i32
    %c0_i32_0 = arith.constant 0 : i32
    %c0_i32_1 = arith.constant 0 : i32
    return %arg0, %c0_i32, %c0_i32_0 : i32, i32, i32
  }
  func.func @transform_1(%arg0: i32) -> (i32, i32) {
    %c0_i32 = arith.constant 0 : i32
    %c0_i32_0 = arith.constant 0 : i32
    %c0_i32_1 = arith.constant 0 : i32
    return %c0_i32, %c0_i32_0 : i32, i32
  }
  func.func @transform_2(%arg0: i32) -> (i32, i32) {
    %c0_i32 = arith.constant 0 : i32
    %c0_i32_0 = arith.constant 0 : i32
    %c0_i32_1 = arith.constant 0 : i32
    return %c0_i32, %c0_i32_0 : i32, i32
  }
  func.func @transform_3(%arg0: i32) -> (i32, i32) {
    %c0_i32 = arith.constant 0 : i32
    %c0_i32_0 = arith.constant 0 : i32
    %c0_i32_1 = arith.constant 0 : i32
    return %c0_i32, %c0_i32_0 : i32, i32
  }
  func.func @transform_4(%arg0: i32) -> (i32, i32) {
    %c0_i32 = arith.constant 0 : i32
    %c0_i32_0 = arith.constant 0 : i32
    %c0_i32_1 = arith.constant 0 : i32
    return %c0_i32, %c0_i32_0 : i32, i32
  }
  func.func @transform_5(%arg0: i32) -> (i32, i32) {
    %c0_i32 = arith.constant 0 : i32
    %c0_i32_0 = arith.constant 0 : i32
    %c0_i32_1 = arith.constant 0 : i32
    return %c0_i32, %c0_i32_0 : i32, i32
  }
  func.func @transform_6(%arg0: i32) -> (i32, i32) {
    %c0_i32 = arith.constant 0 : i32
    %c0_i32_0 = arith.constant 0 : i32
    %c0_i32_1 = arith.constant 0 : i32
    return %c0_i32, %c0_i32_0 : i32, i32
  }
  func.func @transform_7(%arg0: i32) -> (i32, i32) {
    %c0_i32 = arith.constant 0 : i32
    %c0_i32_0 = arith.constant 0 : i32
    return %arg0, %c0_i32 : i32, i32
  }
}

</mosaic_0001>

<bundles_post_ra>
// kernel: _net_forward.1
= control target key start
LH: loop header
LB: loop body
LE: loop exit
PB: predicated region body
PF: predicated region fallthrough
CT: control target
= control target key end

     0   :  { %vm134_vm0 = vcmask 261120   ;;  %vm2474_vm1 = vmmov 0   ;;  %s3898_s1 = inlined_call_operand.vmem [shape: f32[160,256], index: 1, kind: input, shape index: {}]   ;;  %s3899_s0 = inlined_call_operand.vmem [shape: f32[1,224,160], index: 0, kind: input, shape index: {}]   ;;  %s3900_s3 = inlined_call_operand.vmem [shape: f32[640,256], index: 3, kind: input, shape index: {}]   ;;  %s3901_s2 = inlined_call_operand.vmem [shape: f32[1,256], index: 2, kind: input, shape index: {}]   ;;  %s3902_s5 = inlined_call_operand.vmem [shape: f32[896,128], index: 5, kind: input, shape index: {}]   ;;  %s3903_s4 = inlined_call_operand.vmem [shape: f32[1,256], index: 4, kind: input, shape index: {}]   ;;  %s3904_s6 = inlined_call_operand.vmem [shape: f32[1,128], index: 6, kind: input, shape index: {}]   ;;  %s3905_s7 = inlined_call_operand.vmem [shape: f32[8,128], index: 7, kind: output, shape index: {}]  }
   0x1   :  { %v83_v0 = vld [vmem:[%s3898_s1 + $0x8] sm:$0xff]  ;;  %v85_v1 = vld [vmem:[%s3898_s1 + $0x18] sm:$0xff]  ;;  %v82_v2 = vld [vmem:[%s3898_s1] sm:$0xff] }
   0x2   :  { %v2061_v3 = vpack.c.bf16 %v85_v1, %v83_v0  ;;  %v84_v4 = vld [vmem:[%s3898_s1 + $0x10] sm:$0xff]  ;;  %v87_v5 = vld [vmem:[%s3898_s1 + $0x28] sm:$0xff]  ;;  %v89_v6 = vld [vmem:[%s3898_s1 + $0x38] sm:$0xff] }
   0x3   :  { %v2063_v7 = vpack.c.bf16 %v84_v4, %v82_v2  ;;  %v2065_v8 = vpack.c.bf16 %v89_v6, %v87_v5  ;;  %v86_v9 = vld [vmem:[%s3898_s1 + $0x20] sm:$0xff]  ;;  %v88_v10 = vld [vmem:[%s3898_s1 + $0x30] sm:$0xff]  ;;  %v91_v11 = vld [vmem:[%s3898_s1 + $0x48] sm:$0xff] }
   0x4   :  { %2062 = vmatprep.subr.bf16.mxu0 %v2061_v3  ;;  %v93_v12 = vld [vmem:[%s3898_s1 + $0x58] sm:$0xff]  ;;  %v2067_v13 = vpack.c.bf16 %v88_v10, %v86_v9  ;;  %v90_v15 = vld [vmem:[%s3898_s1 + $0x40] sm:$0xff]  ;;  %v92_v16 = vld [vmem:[%s3898_s1 + $0x50] sm:$0xff] }
   0x5   :  { %2064 = vmatpush1.bf16.msra.mxu0 %v2063_v7  ;;  %v2069_v14 = vpack.c.bf16 %v93_v12, %v91_v11  ;;  %v95_v17 = vld [vmem:[%s3898_s1 + $0x68] sm:$0xff]  ;;  %v97_v18 = vld [vmem:[%s3898_s1 + $0x78] sm:$0xff]  ;;  %v2071_v19 = vpack.c.bf16 %v92_v16, %v90_v15  ;;  %v94_v21 = vld [vmem:[%s3898_s1 + $0x60] sm:$0xff] }
   0x6   :  { %2066 = vmatprep.subr.bf16.mxu0 %v2065_v8  ;;  %v2073_v20 = vpack.c.bf16 %v97_v18, %v95_v17  ;;  %v96_v22 = vld [vmem:[%s3898_s1 + $0x70] sm:$0xff]  ;;  %v99_v23 = vld [vmem:[%s3898_s1 + $0x88] sm:$0xff]  ;;  %v101_v24 = vld [vmem:[%s3898_s1 + $0x98] sm:$0xff] }
   0x7   :  { %v2075_v25 = vpack.c.bf16 %v96_v22, %v94_v21  ;;  %v2077_v26 = vpack.c.bf16 %v101_v24, %v99_v23  ;;  %v98_v27 = vld [vmem:[%s3898_s1 + $0x80] sm:$0xff]  ;;  %v100_v28 = vld [vmem:[%s3898_s1 + $0x90] sm:$0xff]  ;;  %v27_v29 = vld [vmem:[%s3899_s0 + $0x8] sm:$0xff] }
   0x8   :  { %v103_v30 = vld [vmem:[%s3898_s1 + $0xa8] sm:$0xff]  ;;  %v105_v31 = vld [vmem:[%s3898_s1 + $0xb8] sm:$0xff]  ;;  %1875 = vmatprep.mubr.msk.f32.mxu0 %vm134_vm0, %v27_v29  ;;  %v2079_v32 = vpack.c.bf16 %v100_v28, %v98_v27  ;;  %v102_v34 = vld [vmem:[%s3898_s1 + $0xa0] sm:$0xff] }
   0x9   :  { %2068 = vmatpush1.bf16.msra.mxu0 %v2067_v13  ;;  %v2081_v33 = vpack.c.bf16 %v105_v31, %v103_v30  ;;  %v104_v35 = vld [vmem:[%s3898_s1 + $0xb0] sm:$0xff]  ;;  %v107_v36 = vld [vmem:[%s3898_s1 + $0xc8] sm:$0xff]  ;;  %v109_v37 = vld [vmem:[%s3898_s1 + $0xd8] sm:$0xff] }
   0xa   :  { %2070 = vmatprep.subr.bf16.mxu0 %v2069_v14  ;;  %v2083_v38 = vpack.c.bf16 %v104_v35, %v102_v34  ;;  %v2085_v39 = vpack.c.bf16 %v109_v37, %v107_v36  ;;  %v106_v40 = vld [vmem:[%s3898_s1 + $0xc0] sm:$0xff]  ;;  %v108_v41 = vld [vmem:[%s3898_s1 + $0xd0] sm:$0xff]  ;;  %v111_v42 = vld [vmem:[%s3898_s1 + $0xe8] sm:$0xff] }
   0xb   :  { %v113_v43 = vld [vmem:[%s3898_s1 + $0xf8] sm:$0xff]  ;;  %v2087_v44 = vpack.c.bf16 %v108_v41, %v106_v40  ;;  %v110_v46 = vld [vmem:[%s3898_s1 + $0xe0] sm:$0xff]  ;;  %v112_v47 = vld [vmem:[%s3898_s1 + $0xf0] sm:$0xff] }
   0xc   :  { %v2089_v45 = vpack.c.bf16 %v113_v43, %v111_v42  ;;  %v115_v48 = vld [vmem:[%s3898_s1 + $0x108] sm:$0xff]  ;;  %v117_v49 = vld [vmem:[%s3898_s1 + $0x118] sm:$0xff]  ;;  %v2091_v50 = vpack.c.bf16 %v112_v47, %v110_v46  ;;  %v114_v52 = vld [vmem:[%s3898_s1 + $0x100] sm:$0xff] }
   0xd   :  { %2072 = vmatpush1.bf16.msra.mxu0 %v2071_v19  ;;  %v2093_v51 = vpack.c.bf16 %v117_v49, %v115_v48  ;;  %v116_v53 = vld [vmem:[%s3898_s1 + $0x110] sm:$0xff]  ;;  %v119_v54 = vld [vmem:[%s3898_s1 + $0x128] sm:$0xff]  ;;  %v121_v55 = vld [vmem:[%s3898_s1 + $0x138] sm:$0xff] }
   0xe   :  { %2074 = vmatprep.subr.bf16.mxu0 %v2073_v20  ;;  %v118_v56 = vld [vmem:[%s3898_s1 + $0x120] sm:$0xff]  ;;  %v120_v57 = vld [vmem:[%s3898_s1 + $0x130] sm:$0xff]  ;;  %v2095_v58 = vpack.c.bf16 %v116_v53, %v114_v52  ;;  %v747_v59 = vld [vmem:[%s3900_s3 + $0x8] sm:$0xff]  ;;  %v2097_v62 = vpack.c.bf16 %v121_v55, %v119_v54 }
   0xf   :  { %v749_v60 = vld [vmem:[%s3900_s3 + $0x18] sm:$0xff]  ;;  %v746_v61 = vld [vmem:[%s3900_s3] sm:$0xff]  ;;  %v748_v0 = vld [vmem:[%s3900_s3 + $0x10] sm:$0xff]  ;;  %v2099_v9 = vpack.c.bf16 %v120_v57, %v118_v56 }
  0x10   :  { %v2101_v63 = vpack.c.bf16 %v749_v60, %v747_v59  ;;  %v751_v1 = vld [vmem:[%s3900_s3 + $0x28] sm:$0xff]  ;;  %v753_v2 = vld [vmem:[%s3900_s3 + $0x38] sm:$0xff]  ;;  %v2103_v3 = vpack.c.bf16 %v748_v0, %v746_v61  ;;  %v750_v5 = vld [vmem:[%s3900_s3 + $0x20] sm:$0xff] }
  0x11   :  { %2076 = vmatpush1.bf16.msra.mxu0 %v2075_v25  ;;  %v2105_v4 = vpack.c.bf16 %v753_v2, %v751_v1  ;;  %v752_v6 = vld [vmem:[%s3900_s3 + $0x30] sm:$0xff]  ;;  %v755_v7 = vld [vmem:[%s3900_s3 + $0x48] sm:$0xff]  ;;  %v757_v8 = vld [vmem:[%s3900_s3 + $0x58] sm:$0xff] }
  0x12   :  { %2078 = vmatprep.subr.bf16.mxu0 %v2077_v26  ;;  %2102 = vmatprep.subr.bf16.mxu1 %v2101_v63  ;;  %v2107_v10 = vpack.c.bf16 %v752_v6, %v750_v5  ;;  %v2109_v11 = vpack.c.bf16 %v757_v8, %v755_v7  ;;  %v754_v12 = vld [vmem:[%s3900_s3 + $0x40] sm:$0xff]  ;;  %v756_v13 = vld [vmem:[%s3900_s3 + $0x50] sm:$0xff]  ;;  %v759_v14 = vld [vmem:[%s3900_s3 + $0x68] sm:$0xff] }
  0x13   :  { %2104 = vmatpush1.bf16.msra.mxu1 %v2103_v3  ;;  %v761_v15 = vld [vmem:[%s3900_s3 + $0x78] sm:$0xff]  ;;  %v26_v16 = vld [vmem:[%s3899_s0] sm:$0xff]  ;;  %v2111_v17 = vpack.c.bf16 %v756_v13, %v754_v12  ;;  %v760_v21 = vld [vmem:[%s3900_s3 + $0x70] sm:$0xff] }
  0x14   :  { %2106 = vmatprep.subr.bf16.mxu1 %v2105_v4  ;;  %v29_v18 = vld [vmem:[%s3899_s0 + $0x18] sm:$0xff]  ;;  %v2113_v19 = vpack.c.bf16 %v761_v15, %v759_v14  ;;  %v758_v20 = vld [vmem:[%s3900_s3 + $0x60] sm:$0xff]  ;;  %v763_v22 = vld [vmem:[%s3900_s3 + $0x88] sm:$0xff] }
  0x15   :  { %2080 = vmatpush1.bf16.msra.mxu0 %v2079_v32  ;;  %v765_v23 = vld [vmem:[%s3900_s3 + $0x98] sm:$0xff]  ;;  %v28_v24 = vld [vmem:[%s3899_s0 + $0x10] sm:$0xff]  ;;  %v2115_v25 = vpack.c.bf16 %v760_v21, %v758_v20  ;;  %v31_v26 = vld [vmem:[%s3899_s0 + $0x28] sm:$0xff] }
  0x16   :  { %2082 = vmatprep.subr.bf16.mxu0 %v2081_v33  ;;  %v2117_v27 = vpack.c.bf16 %v765_v23, %v763_v22  ;;  %v762_v28 = vld [vmem:[%s3900_s3 + $0x80] sm:$0xff]  ;;  %v764_v29 = vld [vmem:[%s3900_s3 + $0x90] sm:$0xff]  ;;  %v767_v30 = vld [vmem:[%s3900_s3 + $0xa8] sm:$0xff] }
  0x17   :  { %2108 = vmatpush1.bf16.msra.mxu1 %v2107_v10  ;;  %v769_v31 = vld [vmem:[%s3900_s3 + $0xb8] sm:$0xff]  ;;  %v30_v32 = vld [vmem:[%s3899_s0 + $0x20] sm:$0xff]  ;;  %v2119_v33 = vpack.c.bf16 %v764_v29, %v762_v28  ;;  %v768_v37 = vld [vmem:[%s3900_s3 + $0xb0] sm:$0xff] }
  0x18   :  { %2110 = vmatprep.subr.bf16.mxu1 %v2109_v11  ;;  %v33_v34 = vld [vmem:[%s3899_s0 + $0x38] sm:$0xff]  ;;  %v2121_v35 = vpack.c.bf16 %v769_v31, %v767_v30  ;;  %v766_v36 = vld [vmem:[%s3900_s3 + $0xa0] sm:$0xff]  ;;  %v32_v40 = vld [vmem:[%s3899_s0 + $0x30] sm:$0xff] }
  0x19   :  { %2084 = vmatpush1.bf16.msra.mxu0 %v2083_v38  ;;  %v771_v38 = vld [vmem:[%s3900_s3 + $0xc8] sm:$0xff]  ;;  %v2123_v41 = vpack.c.bf16 %v768_v37, %v766_v36  ;;  %v777_v47 = vld [vmem:[%s3900_s3 + $0xf8] sm:$0xff]  ;;  %v34_v48 = vld [vmem:[%s3899_s0 + $0x40] sm:$0xff] }
  0x1a   :  { %2086 = vmatprep.subr.bf16.mxu0 %v2085_v39  ;;  %v773_v39 = vld [vmem:[%s3900_s3 + $0xd8] sm:$0xff]  ;;  %v35_v42 = vld [vmem:[%s3899_s0 + $0x48] sm:$0xff]  ;;  %v774_v52 = vld [vmem:[%s3900_s3 + $0xe0] sm:$0xff] }
  0x1b   :  { %2112 = vmatpush1.bf16.msra.mxu1 %v2111_v17  ;;  %v2125_v43 = vpack.c.bf16 %v773_v39, %v771_v38  ;;  %v775_v46 = vld [vmem:[%s3900_s3 + $0xe8] sm:$0xff]  ;;  %v776_v53 = vld [vmem:[%s3900_s3 + $0xf0] sm:$0xff]  ;;  %v781_v55 = vld [vmem:[%s3900_s3 + $0x118] sm:$0xff] }
  0x1c   :  { %2114 = vmatprep.subr.bf16.mxu1 %v2113_v19  ;;  %v779_v54 = vld [vmem:[%s3900_s3 + $0x108] sm:$0xff]  ;;  %v36_v56 = vld [vmem:[%s3899_s0 + $0x50] sm:$0xff]  ;;  %v2131_v57 = vpack.c.bf16 %v776_v53, %v774_v52  ;;  %v778_v60 = vld [vmem:[%s3900_s3 + $0x100] sm:$0xff] }
  0x1d   :  { %2088 = vmatpush1.bf16.msra.mxu0 %v2087_v44  ;;  %v770_v44 = vld [vmem:[%s3900_s3 + $0xc0] sm:$0xff]  ;;  %v2133_v59 = vpack.c.bf16 %v781_v55, %v779_v54  ;;  %v780_v61 = vld [vmem:[%s3900_s3 + $0x110] sm:$0xff]  ;;  %v785_v63 = vld [vmem:[%s3900_s3 + $0x138] sm:$0xff] }
  0x1e   :  { %2090 = vmatprep.subr.bf16.mxu0 %v2089_v45  ;;  %v772_v45 = vld [vmem:[%s3900_s3 + $0xd0] sm:$0xff]  ;;  %v38_v0 = vld [vmem:[%s3899_s0 + $0x60] sm:$0xff]  ;;  %v2135_v1 = vpack.c.bf16 %v780_v61, %v778_v60  ;;  %v41_v2 = vld [vmem:[%s3899_s0 + $0x78] sm:$0xff] }
  0x1f   :  { %2116 = vmatpush1.bf16.msra.mxu1 %v2115_v25  ;;  %v2127_v49 = vpack.c.bf16 %v772_v45, %v770_v44  ;;  %v782_v4 = vld [vmem:[%s3900_s3 + $0x120] sm:$0xff]  ;;  %v784_v5 = vld [vmem:[%s3900_s3 + $0x130] sm:$0xff]  ;;  %v787_v6 = vld [vmem:[%s3900_s3 + $0x148] sm:$0xff] }
  0x20   :  { %2118 = vmatprep.subr.bf16.mxu1 %v2117_v27  ;;  %v789_v7 = vld [vmem:[%s3900_s3 + $0x158] sm:$0xff]  ;;  %v40_v8 = vld [vmem:[%s3899_s0 + $0x70] sm:$0xff]  ;;  %v43_v10 = vld [vmem:[%s3899_s0 + $0x88] sm:$0xff] }
  0x21   :  { %2092 = vmatpush1.bf16.msra.mxu0 %v2091_v50  ;;  %v37_v50 = vld [vmem:[%s3899_s0 + $0x58] sm:$0xff]  ;;  %v2141_v11 = vpack.c.bf16 %v789_v7, %v787_v6  ;;  %v786_v12 = vld [vmem:[%s3900_s3 + $0x140] sm:$0xff]  ;;  %v788_v13 = vld [vmem:[%s3900_s3 + $0x150] sm:$0xff] }
  0x22   :  { %2094 = vmatprep.subr.bf16.mxu0 %v2093_v51  ;;  %v2129_v51 = vpack.c.bf16 %v777_v47, %v775_v46  ;;  %v791_v14 = vld [vmem:[%s3900_s3 + $0x168] sm:$0xff]  ;;  %v793_v15 = vld [vmem:[%s3900_s3 + $0x178] sm:$0xff]  ;;  %v2143_v17 = vpack.c.bf16 %v788_v13, %v786_v12  ;;  %v790_v20 = vld [vmem:[%s3900_s3 + $0x160] sm:$0xff] }
  0x23   :  { %2120 = vmatpush1.bf16.msra.mxu1 %v2119_v33  ;;  %v2145_v19 = vpack.c.bf16 %v793_v15, %v791_v14  ;;  %v792_v21 = vld [vmem:[%s3900_s3 + $0x170] sm:$0xff]  ;;  %v795_v22 = vld [vmem:[%s3900_s3 + $0x188] sm:$0xff]  ;;  %v797_v23 = vld [vmem:[%s3900_s3 + $0x198] sm:$0xff]  ;;  %v2472_v15 = vmov 0.0  }
  0x24   :  { %2122 = vmatprep.subr.bf16.mxu1 %v2121_v35  ;;  %v2147_v25 = vpack.c.bf16 %v792_v21, %v790_v20  ;;  %v2149_v27 = vpack.c.bf16 %v797_v23, %v795_v22  ;;  %v794_v28 = vld [vmem:[%s3900_s3 + $0x180] sm:$0xff]  ;;  %v796_v29 = vld [vmem:[%s3900_s3 + $0x190] sm:$0xff]  ;;  %v53_v36 = vld [vmem:[%s3899_s0 + $0xd8] sm:$0xff]  ;;  %982 = vmatprep.mubr.f32.mxu1 %v2472_v15 }
  0x25   :  { %2096 = vmatpush1.bf16.msra.mxu0 %v2095_v58  ;;  %v39_v58 = vld [vmem:[%s3899_s0 + $0x68] sm:$0xff]  ;;  %v46_v30 = vld [vmem:[%s3899_s0 + $0xa0] sm:$0xff]  ;;  %v2151_v31 = vpack.c.bf16 %v796_v29, %v794_v28  ;;  %v48_v33 = vld [vmem:[%s3899_s0 + $0xb0] sm:$0xff] }
  0x26   :  { %2098 = vmatprep.subr.bf16.mxu0 %v2097_v62  ;;  %v783_v62 = vld [vmem:[%s3900_s3 + $0x128] sm:$0xff]  ;;  %v50_v35 = vld [vmem:[%s3899_s0 + $0xc0] sm:$0xff]  ;;  %v52_v37 = vld [vmem:[%s3899_s0 + $0xd0] sm:$0xff] }
  0x27   :  { %2124 = vmatpush1.bf16.msra.mxu1 %v2123_v41  ;;  %v2137_v3 = vpack.c.bf16 %v785_v63, %v783_v62  ;;  %v55_v38 = vld [vmem:[%s3899_s0 + $0xe8] sm:$0xff]  ;;  %v54_v39 = vld [vmem:[%s3899_s0 + $0xe0] sm:$0xff]  ;;  %v56_v41 = vld [vmem:[%s3899_s0 + $0xf0] sm:$0xff] }
  0x28   :  { %2126 = vmatprep.subr.bf16.mxu1 %v2125_v43  ;;  %v58_v43 = vld [vmem:[%s3899_s0 + $0x100] sm:$0xff]  ;;  %v61_v44 = vld [vmem:[%s3899_s0 + $0x118] sm:$0xff]  ;;  %v60_v45 = vld [vmem:[%s3899_s0 + $0x110] sm:$0xff] }
  0x29   :  { %2100 = vmatpush1.bf16.msra.mxu0 %v2099_v9  ;;  %v2139_v9 = vpack.c.bf16 %v784_v5, %v782_v4  ;;  %v63_v46 = vld [vmem:[%s3899_s0 + $0x128] sm:$0xff]  ;;  %v62_v47 = vld [vmem:[%s3899_s0 + $0x120] sm:$0xff]  ;;  %v69_v52 = vld [vmem:[%s3899_s0 + $0x158] sm:$0xff] }
  0x2a   :  { %v68_v53 = vld [vmem:[%s3899_s0 + $0x150] sm:$0xff]  ;;  %v799_v54 = vld [vmem:[%s3900_s3 + $0x1a8] sm:$0xff]  ;;  %v801_v55 = vld [vmem:[%s3900_s3 + $0x1b8] sm:$0xff] }
  0x2b   :  { %2128 = vmatpush1.bf16.msra.mxu1 %v2127_v49  ;;  %v64_v49 = vld [vmem:[%s3899_s0 + $0x130] sm:$0xff]  ;;  %v70_v61 = vld [vmem:[%s3899_s0 + $0x160] sm:$0xff]  ;;  %v803_v62 = vld [vmem:[%s3900_s3 + $0x1c8] sm:$0xff] }
  0x2c   :  { %284 = vmatmul.mubr.f32.vlgmr.msra.gmra.mrb[0].mxu0 %v26_v16  ;;  %2130 = vmatprep.subr.bf16.mxu1 %v2129_v51  ;;  %v42_v16 = vld [vmem:[%s3899_s0 + $0x80] sm:$0xff]  ;;  %v805_v63 = vld [vmem:[%s3900_s3 + $0x1d8] sm:$0xff]  ;;  %v72_v5 = vld [vmem:[%s3899_s0 + $0x170] sm:$0xff] }
  0x2d   :  { %1876 = vmatprep.mubr.msk.f32.mxu0 %vm134_vm0, %v29_v18  ;;  %v45_v18 = vld [vmem:[%s3899_s0 + $0x98] sm:$0xff]  ;;  %v66_v51 = vld [vmem:[%s3899_s0 + $0x140] sm:$0xff]  ;;  %v807_v6 = vld [vmem:[%s3900_s3 + $0x1e8] sm:$0xff] }
  0x2e   :  { %v809_v7 = vld [vmem:[%s3900_s3 + $0x1f8] sm:$0xff]  ;;  %v74_v13 = vld [vmem:[%s3899_s0 + $0x180] sm:$0xff]  ;;  %v80_v20 = vld [vmem:[%s3899_s0 + $0x1b0] sm:$0xff] }
  0x2f   :  { %2132 = vmatpush1.bf16.msra.mxu1 %v2131_v57  ;;  %v2153_v57 = vpack.c.bf16 %v801_v55, %v799_v54  ;;  %v77_v14 = vld [vmem:[%s3899_s0 + $0x198] sm:$0xff]  ;;  %v811_v21 = vld [vmem:[%s3900_s3 + $0x208] sm:$0xff]  ;;  %v830_v54 = vld [vmem:[%s3900_s3 + $0x2a0] sm:$0xff] }
  0x30   :  { %290 = vmatmul.mubr.f32.gmra.mrb[2].mxu0 %v28_v24  ;;  %2134 = vmatprep.subr.bf16.mxu1 %v2133_v59  ;;  %v44_v24 = vld [vmem:[%s3899_s0 + $0x90] sm:$0xff]  ;;  %v813_v22 = vld [vmem:[%s3900_s3 + $0x218] sm:$0xff] }
  0x31   :  { %1877 = vmatprep.mubr.msk.f32.mxu0 %vm134_vm0, %v31_v26  ;;  %v47_v26 = vld [vmem:[%s3899_s0 + $0xa8] sm:$0xff]  ;;  %v800_v59 = vld [vmem:[%s3900_s3 + $0x1b0] sm:$0xff]  ;;  %v2165_v23 = vpack.c.bf16 %v813_v22, %v811_v21  ;;  %v817_v28 = vld [vmem:[%s3900_s3 + $0x238] sm:$0xff] }
  0x32   :  { %v832_v55 = vld [vmem:[%s3900_s3 + $0x2b0] sm:$0xff]  ;;  %v850_v21 = vld [vmem:[%s3900_s3 + $0x340] sm:$0xff] }
  0x33   :  { %2136 = vmatpush1.bf16.msra.mxu1 %v2135_v1  ;;  %v2157_v1 = vpack.c.bf16 %v805_v63, %v803_v62  ;;  %v839_v63 = vld [vmem:[%s3900_s3 + $0x2e8] sm:$0xff]  ;;  %v852_v22 = vld [vmem:[%s3900_s3 + $0x350] sm:$0xff] }
  0x34   :  { %296 = vmatmul.mubr.f32.gmra.mrb[4].mxu0 %v30_v32  ;;  %2138 = vmatprep.subr.bf16.mxu1 %v2137_v3  ;;  %v49_v32 = vld [vmem:[%s3899_s0 + $0xb8] sm:$0xff]  ;;  %v804_v3 = vld [vmem:[%s3900_s3 + $0x1d0] sm:$0xff] }
  0x35   :  { %1878 = vmatprep.mubr.msk.f32.mxu0 %vm134_vm0, %v33_v34  ;;  %v51_v34 = vld [vmem:[%s3899_s0 + $0xc8] sm:$0xff] }
  0x37   :  { %2140 = vmatpush1.bf16.msra.mxu1 %v2139_v9  ;;  %v2161_v9 = vpack.c.bf16 %v809_v7, %v807_v6  ;;  %v845_v6 = vld [vmem:[%s3900_s3 + $0x318] sm:$0xff] }
  0x38   :  { %302 = vmatmul.mubr.f32.gmra.mrb[6].mxu0 %v32_v40  ;;  %2142 = vmatprep.subr.bf16.mxu1 %v2141_v11  ;;  %v57_v40 = vld [vmem:[%s3899_s0 + $0xf8] sm:$0xff]  ;;  %v808_v11 = vld [vmem:[%s3900_s3 + $0x1f0] sm:$0xff] }
  0x39   :  { %1879 = vmatprep.mubr.msk.f32.mxu0 %vm134_vm0, %v35_v42  ;;  %v59_v42 = vld [vmem:[%s3899_s0 + $0x108] sm:$0xff] }
  0x3b   :  { %2144 = vmatpush1.bf16.msra.mxu1 %v2143_v17  ;;  %v79_v17 = vld [vmem:[%s3899_s0 + $0x1a8] sm:$0xff] }
  0x3c   :  { %308 = vmatmul.mubr.f32.gmra.mrb[8].mxu0 %v34_v48  ;;  %2146 = vmatprep.subr.bf16.mxu1 %v2145_v19  ;;  %v65_v48 = vld [vmem:[%s3899_s0 + $0x138] sm:$0xff] }
  0x3d   :  { %1880 = vmatprep.mubr.msk.f32.mxu0 %vm134_vm0, %v37_v50  ;;  %v67_v50 = vld [vmem:[%s3899_s0 + $0x148] sm:$0xff]  ;;  %v81_v19 = vld [vmem:[%s3899_s0 + $0x1b8] sm:$0xff] }
  0x3f   :  { %2148 = vmatpush1.bf16.msra.mxu1 %v2147_v25  ;;  %v812_v25 = vld [vmem:[%s3900_s3 + $0x210] sm:$0xff] }
  0x40   :  { %314 = vmatmul.mubr.f32.gmra.mrb[10].mxu0 %v36_v56  ;;  %2150 = vmatprep.subr.bf16.mxu1 %v2149_v27  ;;  %v71_v56 = vld [vmem:[%s3899_s0 + $0x168] sm:$0xff] }
  0x41   :  { %1881 = vmatprep.mubr.msk.f32.mxu0 %vm134_vm0, %v39_v58  ;;  %v798_v58 = vld [vmem:[%s3900_s3 + $0x1a0] sm:$0xff]  ;;  %v815_v27 = vld [vmem:[%s3900_s3 + $0x228] sm:$0xff] }
  0x42   :  { %v2155_v60 = vpack.c.bf16 %v800_v59, %v798_v58  ;;  %v2169_v29 = vpack.c.bf16 %v817_v28, %v815_v27  ;;  %v837_v58 = vld [vmem:[%s3900_s3 + $0x2d8] sm:$0xff]  ;;  %v854_v27 = vld [vmem:[%s3900_s3 + $0x360] sm:$0xff]  ;;  %v856_v28 = vld [vmem:[%s3900_s3 + $0x370] sm:$0xff] }
  0x43   :  { %2152 = vmatpush1.bf16.msra.mxu1 %v2151_v31  ;;  %v816_v31 = vld [vmem:[%s3900_s3 + $0x230] sm:$0xff] }
  0x44   :  { %320 = vmatmul.mubr.f32.gmra.mrb[12].mxu0 %v38_v0  ;;  %2154 = vmatprep.subr.bf16.mxu1 %v2153_v57  ;;  %v73_v0 = vld [vmem:[%s3899_s0 + $0x178] sm:$0xff]  ;;  %v835_v57 = vld [vmem:[%s3900_s3 + $0x2c8] sm:$0xff] }
  0x45   :  { %1882 = vmatprep.mubr.msk.f32.mxu0 %vm134_vm0, %v41_v2  ;;  %v802_v2 = vld [vmem:[%s3900_s3 + $0x1c0] sm:$0xff]  ;;  %v2189_v59 = vpack.c.bf16 %v837_v58, %v835_v57 }
  0x46   :  { %v2159_v4 = vpack.c.bf16 %v804_v3, %v802_v2  ;;  %v838_v2 = vld [vmem:[%s3900_s3 + $0x2e0] sm:$0xff]  ;;  %v840_v3 = vld [vmem:[%s3900_s3 + $0x2f0] sm:$0xff] }
  0x47   :  { %2156 = vmatpush1.bf16.msra.mxu1 %v2155_v60  ;;  %v834_v60 = vld [vmem:[%s3900_s3 + $0x2c0] sm:$0xff] }
  0x48   :  { %326 = vmatmul.mubr.f32.gmra.mrb[14].mxu0 %v40_v8  ;;  %2158 = vmatprep.subr.bf16.mxu1 %v2157_v1  ;;  %v75_v8 = vld [vmem:[%s3899_s0 + $0x188] sm:$0xff] }
  0x49   :  { %1883 = vmatprep.mubr.msk.f32.mxu0 %vm134_vm0, %v43_v10  ;;  %v806_v10 = vld [vmem:[%s3900_s3 + $0x1e0] sm:$0xff] }
  0x4a   :  { %v2163_v12 = vpack.c.bf16 %v808_v11, %v806_v10  ;;  %v847_v11 = vld [vmem:[%s3900_s3 + $0x328] sm:$0xff] }
  0x4b   :  { %2160 = vmatpush1.bf16.msra.mxu1 %v2159_v4  ;;  %v2195_v4 = vpack.c.bf16 %v840_v3, %v838_v2 }
  0x4c   :  { %332 = vmatmul.mubr.f32.gmra.mrb[16].mxu0 %v42_v16  ;;  %2162 = vmatprep.subr.bf16.mxu1 %v2161_v9  ;;  %v76_v16 = vld [vmem:[%s3899_s0 + $0x190] sm:$0xff] }
  0x4d   :  { %1884 = vmatprep.mubr.msk.f32.mxu0 %vm134_vm0, %v45_v18  ;;  %v78_v18 = vld [vmem:[%s3899_s0 + $0x1a0] sm:$0xff]  ;;  %v844_v9 = vld [vmem:[%s3900_s3 + $0x310] sm:$0xff] }
  0x4f   :  { %2164 = vmatpush1.bf16.msra.mxu1 %v2163_v12  ;;  %v849_v12 = vld [vmem:[%s3900_s3 + $0x338] sm:$0xff] }
  0x50   :  { %338 = vmatmul.mubr.f32.gmra.mrb[18].mxu0 %v44_v24  ;;  %v810_v24 = vld [vmem:[%s3900_s3 + $0x200] sm:$0xff]  ;;  %2166 = vmatprep.subr.bf16.mxu1 %v2165_v23  ;;  %v2207_v23 = vpack.c.bf16 %v852_v22, %v850_v21 }
  0x51   :  { %1885 = vmatprep.mubr.msk.f32.mxu0 %vm134_vm0, %v47_v26  ;;  %v2167_v26 = vpack.c.bf16 %v812_v25, %v810_v24  ;;  %v855_v24 = vld [vmem:[%s3900_s3 + $0x368] sm:$0xff]  ;;  %v857_v25 = vld [vmem:[%s3900_s3 + $0x378] sm:$0xff] }
  0x52   :  { %983 = vmatmul.mubr.f32.vlgmr.msra.gmra.mrb[0].mxu1 %v2472_v15 }
  0x53   :  { %2168 = vmatpush1.bf16.msra.mxu1 %v2167_v26  ;;  %v2209_v26 = vpack.c.bf16 %v857_v25, %v855_v24 }
  0x54   :  { %344 = vmatmul.mubr.f32.gmra.mrb[20].mxu0 %v46_v30  ;;  %v814_v30 = vld [vmem:[%s3900_s3 + $0x220] sm:$0xff]  ;;  %2170 = vmatprep.subr.bf16.mxu1 %v2169_v29  ;;  %v2211_v29 = vpack.c.bf16 %v856_v28, %v854_v27 }
  0x55   :  { %1886 = vmatprep.mubr.msk.f32.mxu0 %vm134_vm0, %v49_v32  ;;  %v2171_v32 = vpack.c.bf16 %v816_v31, %v814_v30  ;;  %v859_v30 = vld [vmem:[%s3900_s3 + $0x388] sm:$0xff]  ;;  %v861_v31 = vld [vmem:[%s3900_s3 + $0x398] sm:$0xff] }
  0x57   :  { %2172 = vmatpush1.bf16.msra.mxu1 %v2171_v32  ;;  %v2213_v32 = vpack.c.bf16 %v861_v31, %v859_v30 }
  0x58   :  { %350 = vmatmul.mubr.f32.gmra.mrb[22].mxu0 %v48_v33  ;;  %v819_v33 = vld [vmem:[%s3900_s3 + $0x248] sm:$0xff] }
  0x59   :  { %1887 = vmatprep.mubr.msk.f32.mxu0 %vm134_vm0, %v51_v34  ;;  %v821_v34 = vld [vmem:[%s3900_s3 + $0x258] sm:$0xff] }
  0x5c   :  { %356 = vmatmul.mubr.f32.gmra.mrb[24].mxu0 %v50_v35  ;;  %v2173_v35 = vpack.c.bf16 %v821_v34, %v819_v33  ;;  %v858_v33 = vld [vmem:[%s3900_s3 + $0x380] sm:$0xff]  ;;  %v860_v34 = vld [vmem:[%s3900_s3 + $0x390] sm:$0xff] }
  0x5d   :  { %1888 = vmatprep.mubr.msk.f32.mxu0 %vm134_vm0, %v53_v36  ;;  %v818_v36 = vld [vmem:[%s3900_s3 + $0x240] sm:$0xff] }
  0x5e   :  { %2174 = vmatprep.subr.bf16.mxu1 %v2173_v35  ;;  %v2215_v35 = vpack.c.bf16 %v860_v34, %v858_v33 }
  0x60   :  { %362 = vmatmul.mubr.f32.gmra.mrb[26].mxu0 %v52_v37  ;;  %v820_v37 = vld [vmem:[%s3900_s3 + $0x250] sm:$0xff] }
  0x61   :  { %1889 = vmatprep.mubr.msk.f32.mxu0 %vm134_vm0, %v55_v38  ;;  %v2175_v38 = vpack.c.bf16 %v820_v37, %v818_v36  ;;  %v863_v36 = vld [vmem:[%s3900_s3 + $0x3a8] sm:$0xff]  ;;  %v865_v37 = vld [vmem:[%s3900_s3 + $0x3b8] sm:$0xff] }
  0x63   :  { %2176 = vmatpush1.bf16.msra.mxu1 %v2175_v38  ;;  %v2217_v38 = vpack.c.bf16 %v865_v37, %v863_v36 }
  0x64   :  { %368 = vmatmul.mubr.f32.gmra.mrb[28].mxu0 %v54_v39  ;;  %v823_v39 = vld [vmem:[%s3900_s3 + $0x268] sm:$0xff] }
  0x65   :  { %1890 = vmatprep.mubr.msk.f32.mxu0 %vm134_vm0, %v57_v40  ;;  %v825_v40 = vld [vmem:[%s3900_s3 + $0x278] sm:$0xff] }
  0x68   :  { %374 = vmatmul.mubr.f32.gmra.mrb[30].mxu0 %v56_v41  ;;  %v2177_v41 = vpack.c.bf16 %v825_v40, %v823_v39  ;;  %v862_v39 = vld [vmem:[%s3900_s3 + $0x3a0] sm:$0xff]  ;;  %v864_v40 = vld [vmem:[%s3900_s3 + $0x3b0] sm:$0xff] }
  0x69   :  { %1891 = vmatprep.mubr.msk.f32.mxu0 %vm134_vm0, %v59_v42  ;;  %v822_v42 = vld [vmem:[%s3900_s3 + $0x260] sm:$0xff] }
  0x6a   :  { %2178 = vmatprep.subr.bf16.mxu1 %v2177_v41  ;;  %v2219_v41 = vpack.c.bf16 %v864_v40, %v862_v39 }
  0x6c   :  { %380 = vmatmul.mubr.f32.gmra.mrb[32].mxu0 %v58_v43  ;;  %v824_v43 = vld [vmem:[%s3900_s3 + $0x270] sm:$0xff] }
  0x6d   :  { %1892 = vmatprep.mubr.msk.f32.mxu0 %vm134_vm0, %v61_v44  ;;  %v2179_v44 = vpack.c.bf16 %v824_v43, %v822_v42  ;;  %v867_v42 = vld [vmem:[%s3900_s3 + $0x3c8] sm:$0xff]  ;;  %v869_v43 = vld [vmem:[%s3900_s3 + $0x3d8] sm:$0xff] }
  0x6f   :  { %2180 = vmatpush1.bf16.msra.mxu1 %v2179_v44  ;;  %v2221_v44 = vpack.c.bf16 %v869_v43, %v867_v42 }
  0x70   :  { %386 = vmatmul.mubr.f32.gmra.mrb[34].mxu0 %v60_v45  ;;  %v827_v45 = vld [vmem:[%s3900_s3 + $0x288] sm:$0xff] }
  0x71   :  { %1893 = vmatprep.mubr.msk.f32.mxu0 %vm134_vm0, %v63_v46  ;;  %v829_v46 = vld [vmem:[%s3900_s3 + $0x298] sm:$0xff] }
  0x74   :  { %392 = vmatmul.mubr.f32.gmra.mrb[36].mxu0 %v62_v47  ;;  %v2181_v47 = vpack.c.bf16 %v829_v46, %v827_v45  ;;  %v866_v45 = vld [vmem:[%s3900_s3 + $0x3c0] sm:$0xff]  ;;  %v868_v46 = vld [vmem:[%s3900_s3 + $0x3d0] sm:$0xff] }
  0x75   :  { %1894 = vmatprep.mubr.msk.f32.mxu0 %vm134_vm0, %v65_v48  ;;  %v826_v48 = vld [vmem:[%s3900_s3 + $0x280] sm:$0xff] }
  0x76   :  { %2182 = vmatprep.subr.bf16.mxu1 %v2181_v47  ;;  %v2223_v47 = vpack.c.bf16 %v868_v46, %v866_v45 }
  0x78   :  { %398 = vmatmul.mubr.f32.gmra.mrb[38].mxu0 %v64_v49  ;;  %v828_v49 = vld [vmem:[%s3900_s3 + $0x290] sm:$0xff] }
  0x79   :  { %1895 = vmatprep.mubr.msk.f32.mxu0 %vm134_vm0, %v67_v50  ;;  %v2183_v50 = vpack.c.bf16 %v828_v49, %v826_v48  ;;  %v871_v48 = vld [vmem:[%s3900_s3 + $0x3e8] sm:$0xff]  ;;  %v873_v49 = vld [vmem:[%s3900_s3 + $0x3f8] sm:$0xff] }
  0x7b   :  { %2184 = vmatpush1.bf16.msra.mxu1 %v2183_v50  ;;  %v2225_v50 = vpack.c.bf16 %v873_v49, %v871_v48 }
  0x7c   :  { %404 = vmatmul.mubr.f32.gmra.mrb[40].mxu0 %v66_v51  ;;  %v831_v51 = vld [vmem:[%s3900_s3 + $0x2a8] sm:$0xff] }
  0x7d   :  { %1896 = vmatprep.mubr.msk.f32.mxu0 %vm134_vm0, %v69_v52  ;;  %v833_v52 = vld [vmem:[%s3900_s3 + $0x2b8] sm:$0xff] }
  0x80   :  { %410 = vmatmul.mubr.f32.gmra.mrb[42].mxu0 %v68_v53  ;;  %v2185_v53 = vpack.c.bf16 %v833_v52, %v831_v51  ;;  %v870_v51 = vld [vmem:[%s3900_s3 + $0x3e0] sm:$0xff]  ;;  %v872_v52 = vld [vmem:[%s3900_s3 + $0x3f0] sm:$0xff] }
  0x81   :  { %1897 = vmatprep.mubr.msk.f32.mxu0 %vm134_vm0, %v71_v56  ;;  %v2187_v56 = vpack.c.bf16 %v832_v55, %v830_v54  ;;  %v875_v54 = vld [vmem:[%s3900_s3 + $0x408] sm:$0xff]  ;;  %v877_v55 = vld [vmem:[%s3900_s3 + $0x418] sm:$0xff] }
  0x82   :  { %2186 = vmatprep.subr.bf16.mxu1 %v2185_v53  ;;  %v2227_v53 = vpack.c.bf16 %v872_v52, %v870_v51  ;;  %v2229_v57 = vpack.c.bf16 %v877_v55, %v875_v54 }
  0x83   :  { %2188 = vmatpush1.bf16.msra.mxu1 %v2187_v56  ;;  %v124_v56 = vlaneseq }
  0x84   :  { %416 = vmatmul.mubr.f32.gmra.mrb[44].mxu0 %v70_v61  ;;  %v836_v61 = vld [vmem:[%s3900_s3 + $0x2d0] sm:$0xff]  ;;  %2190 = vmatprep.subr.bf16.mxu1 %v2189_v59 }
  0x85   :  { %1898 = vmatprep.mubr.msk.f32.mxu0 %vm134_vm0, %v73_v0  ;;  %v2191_v62 = vpack.c.bf16 %v836_v61, %v834_v60  ;;  %v841_v0 = vld [vmem:[%s3900_s3 + $0x2f8] sm:$0xff]  ;;  %v3224_v58 = vshrl.u32 %v124_v56, 7  ;;  %v122_v60 = vld [vmem:[%s3901_s2] sm:$0x3] }
  0x86   :  { %v2193_v1 = vpack.c.bf16 %v841_v0, %v839_v63 }
  0x87   :  { %2192 = vmatpush1.bf16.msra.mxu1 %v2191_v62  ;;  %v126_v59 = vsub.s32 0, %v3224_v58  ;;  %v130_v61 = vsub.s32 1, %v3224_v58 }
  0x88   :  { %422 = vmatmul.mubr.f32.gmra.mrb[46].mxu0 %v72_v5  ;;  %2194 = vmatprep.subr.bf16.mxu1 %v2193_v1  ;;  %v843_v5 = vld [vmem:[%s3900_s3 + $0x308] sm:$0xff] }
  0x89   :  { %1899 = vmatprep.mubr.msk.f32.mxu0 %vm134_vm0, %v75_v8  ;;  %v2197_v7 = vpack.c.bf16 %v845_v6, %v843_v5  ;;  %v842_v8 = vld [vmem:[%s3900_s3 + $0x300] sm:$0xff]  ;;  %v3233_v62 = vrot.slane %v122_v60, %v126_v59  ;;  %v3237_v63 = vrot.slane %v122_v60, %v130_v61 }
  0x8a   :  { %v2199_v10 = vpack.c.bf16 %v844_v9, %v842_v8 }
  0x8b   :  { %2196 = vmatpush1.bf16.msra.mxu1 %v2195_v4 }
  0x8c   :  { %428 = vmatmul.mubr.f32.gmra.mrb[48].mxu0 %v74_v13  ;;  %2198 = vmatprep.subr.bf16.mxu1 %v2197_v7  ;;  %v2201_v13 = vpack.c.bf16 %v849_v12, %v847_v11 }
  0x8d   :  { %1900 = vmatprep.mubr.msk.f32.mxu0 %vm134_vm0, %v77_v14  ;;  %v846_v14 = vld [vmem:[%s3900_s3 + $0x320] sm:$0xff] }
  0x8f   :  { %2200 = vmatpush1.bf16.msra.mxu1 %v2199_v10 }
  0x90   :  { %434 = vmatmul.mubr.f32.gmra.mrb[50].mxu0 %v76_v16  ;;  %v848_v16 = vld [vmem:[%s3900_s3 + $0x330] sm:$0xff]  ;;  %2202 = vmatprep.subr.bf16.mxu1 %v2201_v13 }
  0x91   :  { %1901 = vmatprep.mubr.msk.f32.mxu0 %vm134_vm0, %v79_v17  ;;  %v2203_v17 = vpack.c.bf16 %v848_v16, %v846_v14 }
  0x93   :  { %2204 = vmatpush1.bf16.msra.mxu1 %v2203_v17 }
  0x94   :  { %440 = vmatmul.mubr.f32.gmra.mrb[52].mxu0 %v78_v18  ;;  %v851_v18 = vld [vmem:[%s3900_s3 + $0x348] sm:$0xff] }
  0x95   :  { %1902 = vmatprep.mubr.msk.f32.mxu0 %vm134_vm0, %v81_v19  ;;  %v853_v19 = vld [vmem:[%s3900_s3 + $0x358] sm:$0xff] }
  0x98   :  { %446 = vmatmul.mubr.f32.gmra.mrb[54].mxu0 %v80_v20  ;;  %v2205_v20 = vpack.c.bf16 %v853_v19, %v851_v18 }
  0x9a   :  { %2206 = vmatprep.subr.bf16.mxu1 %v2205_v20 }
  0x9b   :  { %2208 = vmatpush1.bf16.msra.mxu1 %v2207_v23 }
  0x9c   :  { %2210 = vmatprep.subr.bf16.mxu1 %v2209_v26 }
  0x9f   :  { %2212 = vmatpush1.bf16.msra.mxu1 %v2211_v29 }
  0xa0   :  { %2214 = vmatprep.subr.bf16.mxu1 %v2213_v32 }
  0xa3   :  { %2216 = vmatpush1.bf16.msra.mxu1 %v2215_v35 }
  0xa4   :  { %2218 = vmatprep.subr.bf16.mxu1 %v2217_v38 }
  0xa7   :  { %2220 = vmatpush1.bf16.msra.mxu1 %v2219_v41 }
  0xa8   :  { %2222 = vmatprep.subr.bf16.mxu1 %v2221_v44 }
  0xab   :  { %2224 = vmatpush1.bf16.msra.mxu1 %v2223_v47 }
  0xac   :  { %2226 = vmatprep.subr.bf16.mxu1 %v2225_v50 }
  0xaf   :  { %2228 = vmatpush1.bf16.msra.mxu1 %v2227_v53 }
  0xb0   :  { %2230 = vmatprep.subr.bf16.mxu1 %v2229_v57 }
  0xff   :  { %v285_v0 = vpop.f32.mrb[0].mxu0 }
 0x100   :  { %v286_v1 = vadd.f32 %v285_v0, %v3233_v62  ;;  %v287_v2 = vpop.f32.mrb[1].mxu0 }
 0x101   :  { %v288_v3 = vadd.f32 %v287_v2, %v3237_v63 }
 0x102   :  { %v452_v4 = vmax.f32 %v286_v1, 0.0 }
 0x103   :  { %v453_v5 = vmax.f32 %v288_v3, 0.0  ;;  %v291_v6 = vpop.f32.mrb[2].mxu0 }
 0x104   :  { %v292_v7 = vadd.f32 %v291_v6, %v3233_v62  ;;  %v293_v8 = vpop.f32.mrb[3].mxu0 }
 0x105   :  { %v508_v9 = vmax.f32 %v452_v4, %v453_v5  ;;  %v294_v10 = vadd.f32 %v293_v8, %v3237_v63 }
 0x106   :  { %v454_v11 = vmax.f32 %v292_v7, 0.0 }
 0x107   :  { %v455_v12 = vmax.f32 %v294_v10, 0.0  ;;  %v297_v13 = vpop.f32.mrb[4].mxu0 }
 0x108   :  { %v298_v14 = vadd.f32 %v297_v13, %v3233_v62  ;;  %v299_v16 = vpop.f32.mrb[5].mxu0 }
 0x109   :  { %v509_v17 = vmax.f32 %v454_v11, %v455_v12  ;;  %v300_v18 = vadd.f32 %v299_v16, %v3237_v63 }
 0x10a   :  { %v456_v19 = vmax.f32 %v298_v14, 0.0 }
 0x10b   :  { %v457_v20 = vmax.f32 %v300_v18, 0.0  ;;  %v303_v21 = vpop.f32.mrb[6].mxu0  ;;  %v3245_v22 = vmax.f32 %v508_v9, %v509_v17 }
 0x10c   :  { %v304_v23 = vadd.f32 %v303_v21, %v3233_v62  ;;  %v305_v24 = vpop.f32.mrb[7].mxu0 }
 0x10d   :  { %v510_v25 = vmax.f32 %v456_v19, %v457_v20  ;;  %v306_v26 = vadd.f32 %v305_v24, %v3237_v63  ;;  %988 = vmatprep.mubr.f32.mxu1 %v3245_v22 }
 0x10e   :  { %v458_v27 = vmax.f32 %v304_v23, 0.0  ;;  %989 = vmatmul.mubr.f32.gmra.mrb[2].mxu1 %v2472_v15 }
 0x10f   :  { %v459_v28 = vmax.f32 %v306_v26, 0.0  ;;  %v309_v29 = vpop.f32.mrb[8].mxu0 }
 0x110   :  { %v310_v30 = vadd.f32 %v309_v29, %v3233_v62  ;;  %v311_v31 = vpop.f32.mrb[9].mxu0 }
 0x111   :  { %v511_v32 = vmax.f32 %v458_v27, %v459_v28  ;;  %v312_v33 = vadd.f32 %v311_v31, %v3237_v63 }
 0x112   :  { %v460_v34 = vmax.f32 %v310_v30, 0.0 }
 0x113   :  { %v3253_v35 = vmax.f32 %v510_v25, %v511_v32  ;;  %v461_v36 = vmax.f32 %v312_v33, 0.0  ;;  %v315_v37 = vpop.f32.mrb[10].mxu0 }
 0x114   :  { %v316_v38 = vadd.f32 %v315_v37, %v3233_v62  ;;  %v317_v39 = vpop.f32.mrb[11].mxu0 }
 0x115   :  { %v512_v40 = vmax.f32 %v460_v34, %v461_v36  ;;  %v318_v41 = vadd.f32 %v317_v39, %v3237_v63  ;;  %994 = vmatprep.mubr.f32.mxu1 %v3253_v35 }
 0x116   :  { %v462_v42 = vmax.f32 %v316_v38, 0.0  ;;  %995 = vmatmul.mubr.f32.gmra.mrb[4].mxu1 %v3245_v22 }
 0x117   :  { %v463_v43 = vmax.f32 %v318_v41, 0.0  ;;  %v321_v44 = vpop.f32.mrb[12].mxu0 }
 0x118   :  { %v322_v45 = vadd.f32 %v321_v44, %v3233_v62  ;;  %v323_v46 = vpop.f32.mrb[13].mxu0 }
 0x119   :  { %v513_v47 = vmax.f32 %v462_v42, %v463_v43  ;;  %v324_v48 = vadd.f32 %v323_v46, %v3237_v63 }
 0x11a   :  { %v464_v49 = vmax.f32 %v322_v45, 0.0 }
 0x11b   :  { %v3261_v50 = vmax.f32 %v512_v40, %v513_v47  ;;  %v465_v51 = vmax.f32 %v324_v48, 0.0  ;;  %v327_v52 = vpop.f32.mrb[14].mxu0 }
 0x11c   :  { %v328_v53 = vadd.f32 %v327_v52, %v3233_v62  ;;  %v329_v54 = vpop.f32.mrb[15].mxu0 }
 0x11d   :  { %v514_v55 = vmax.f32 %v464_v49, %v465_v51  ;;  %v330_v57 = vadd.f32 %v329_v54, %v3237_v63  ;;  %1000 = vmatprep.mubr.f32.mxu1 %v3261_v50 }
 0x11e   :  { %v466_v60 = vmax.f32 %v328_v53, 0.0  ;;  %1001 = vmatmul.mubr.f32.gmra.mrb[6].mxu1 %v3253_v35 }
 0x11f   :  { %v467_v0 = vmax.f32 %v330_v57, 0.0  ;;  %v333_v1 = vpop.f32.mrb[16].mxu0 }
 0x120   :  { %v334_v2 = vadd.f32 %v333_v1, %v3233_v62  ;;  %v335_v3 = vpop.f32.mrb[17].mxu0 }
 0x121   :  { %v515_v4 = vmax.f32 %v466_v60, %v467_v0  ;;  %v336_v5 = vadd.f32 %v335_v3, %v3237_v63 }
 0x122   :  { %v468_v6 = vmax.f32 %v334_v2, 0.0 }
 0x123   :  { %v3269_v7 = vmax.f32 %v514_v55, %v515_v4  ;;  %v469_v8 = vmax.f32 %v336_v5, 0.0  ;;  %v339_v9 = vpop.f32.mrb[18].mxu0 }
 0x124   :  { %v340_v10 = vadd.f32 %v339_v9, %v3233_v62  ;;  %v341_v11 = vpop.f32.mrb[19].mxu0 }
 0x125   :  { %v516_v12 = vmax.f32 %v468_v6, %v469_v8  ;;  %v342_v13 = vadd.f32 %v341_v11, %v3237_v63  ;;  %1006 = vmatprep.mubr.f32.mxu1 %v3269_v7 }
 0x126   :  { %v470_v14 = vmax.f32 %v340_v10, 0.0  ;;  %1007 = vmatmul.mubr.f32.gmra.mrb[8].mxu1 %v3261_v50 }
 0x127   :  { %v471_v16 = vmax.f32 %v342_v13, 0.0  ;;  %v345_v17 = vpop.f32.mrb[20].mxu0 }
 0x128   :  { %v346_v18 = vadd.f32 %v345_v17, %v3233_v62  ;;  %v347_v19 = vpop.f32.mrb[21].mxu0 }
 0x129   :  { %v517_v20 = vmax.f32 %v470_v14, %v471_v16  ;;  %v348_v21 = vadd.f32 %v347_v19, %v3237_v63 }
 0x12a   :  { %v472_v23 = vmax.f32 %v346_v18, 0.0 }
 0x12b   :  { %v3277_v24 = vmax.f32 %v516_v12, %v517_v20  ;;  %v473_v25 = vmax.f32 %v348_v21, 0.0  ;;  %v351_v26 = vpop.f32.mrb[22].mxu0 }
 0x12c   :  { %v352_v27 = vadd.f32 %v351_v26, %v3233_v62  ;;  %v353_v28 = vpop.f32.mrb[23].mxu0 }
 0x12d   :  { %v518_v29 = vmax.f32 %v472_v23, %v473_v25  ;;  %v354_v30 = vadd.f32 %v353_v28, %v3237_v63  ;;  %1012 = vmatprep.mubr.f32.mxu1 %v3277_v24 }
 0x12e   :  { %v474_v31 = vmax.f32 %v352_v27, 0.0  ;;  %1013 = vmatmul.mubr.f32.gmra.mrb[10].mxu1 %v3269_v7 }
 0x12f   :  { %v475_v32 = vmax.f32 %v354_v30, 0.0  ;;  %v357_v33 = vpop.f32.mrb[24].mxu0 }
 0x130   :  { %v358_v34 = vadd.f32 %v357_v33, %v3233_v62  ;;  %v359_v36 = vpop.f32.mrb[25].mxu0 }
 0x131   :  { %v519_v37 = vmax.f32 %v474_v31, %v475_v32  ;;  %v360_v38 = vadd.f32 %v359_v36, %v3237_v63 }
 0x132   :  { %v476_v39 = vmax.f32 %v358_v34, 0.0 }
 0x133   :  { %v3285_v40 = vmax.f32 %v518_v29, %v519_v37  ;;  %v477_v41 = vmax.f32 %v360_v38, 0.0  ;;  %v363_v42 = vpop.f32.mrb[26].mxu0 }
 0x134   :  { %v364_v43 = vadd.f32 %v363_v42, %v3233_v62  ;;  %v365_v44 = vpop.f32.mrb[27].mxu0 }
 0x135   :  { %v520_v45 = vmax.f32 %v476_v39, %v477_v41  ;;  %v366_v46 = vadd.f32 %v365_v44, %v3237_v63  ;;  %1018 = vmatprep.mubr.f32.mxu1 %v3285_v40 }
 0x136   :  { %v478_v47 = vmax.f32 %v364_v43, 0.0  ;;  %1019 = vmatmul.mubr.f32.gmra.mrb[12].mxu1 %v3277_v24 }
 0x137   :  { %v479_v48 = vmax.f32 %v366_v46, 0.0  ;;  %v369_v49 = vpop.f32.mrb[28].mxu0 }
 0x138   :  { %v370_v51 = vadd.f32 %v369_v49, %v3233_v62  ;;  %v371_v52 = vpop.f32.mrb[29].mxu0 }
 0x139   :  { %v521_v53 = vmax.f32 %v478_v47, %v479_v48  ;;  %v372_v54 = vadd.f32 %v371_v52, %v3237_v63 }
 0x13a   :  { %v480_v55 = vmax.f32 %v370_v51, 0.0 }
 0x13b   :  { %v3293_v57 = vmax.f32 %v520_v45, %v521_v53  ;;  %v481_v60 = vmax.f32 %v372_v54, 0.0  ;;  %v375_v0 = vpop.f32.mrb[30].mxu0 }
 0x13c   :  { %v376_v1 = vadd.f32 %v375_v0, %v3233_v62  ;;  %v377_v2 = vpop.f32.mrb[31].mxu0 }
 0x13d   :  { %v522_v3 = vmax.f32 %v480_v55, %v481_v60  ;;  %v378_v4 = vadd.f32 %v377_v2, %v3237_v63  ;;  %1024 = vmatprep.mubr.f32.mxu1 %v3293_v57 }
 0x13e   :  { %v482_v5 = vmax.f32 %v376_v1, 0.0  ;;  %1025 = vmatmul.mubr.f32.gmra.mrb[14].mxu1 %v3285_v40 }
 0x13f   :  { %v483_v6 = vmax.f32 %v378_v4, 0.0  ;;  %v381_v8 = vpop.f32.mrb[32].mxu0 }
 0x140   :  { %v382_v9 = vadd.f32 %v381_v8, %v3233_v62  ;;  %v383_v10 = vpop.f32.mrb[33].mxu0 }
 0x141   :  { %v523_v11 = vmax.f32 %v482_v5, %v483_v6  ;;  %v384_v12 = vadd.f32 %v383_v10, %v3237_v63 }
 0x142   :  { %v484_v13 = vmax.f32 %v382_v9, 0.0 }
 0x143   :  { %v3301_v14 = vmax.f32 %v522_v3, %v523_v11  ;;  %v485_v16 = vmax.f32 %v384_v12, 0.0  ;;  %v387_v17 = vpop.f32.mrb[34].mxu0 }
 0x144   :  { %v388_v18 = vadd.f32 %v387_v17, %v3233_v62  ;;  %v389_v19 = vpop.f32.mrb[35].mxu0 }
 0x145   :  { %v524_v20 = vmax.f32 %v484_v13, %v485_v16  ;;  %v390_v21 = vadd.f32 %v389_v19, %v3237_v63  ;;  %1030 = vmatprep.mubr.f32.mxu1 %v3301_v14 }
 0x146   :  { %v486_v23 = vmax.f32 %v388_v18, 0.0  ;;  %1031 = vmatmul.mubr.f32.gmra.mrb[16].mxu1 %v3293_v57 }
 0x147   :  { %v487_v25 = vmax.f32 %v390_v21, 0.0  ;;  %v393_v26 = vpop.f32.mrb[36].mxu0  ;;  %v1472_v21 = vld [vmem:[%s3902_s5 + $0x80] sm:$0xff] }
 0x148   :  { %v394_v27 = vadd.f32 %v393_v26, %v3233_v62  ;;  %v395_v28 = vpop.f32.mrb[37].mxu0 }
 0x149   :  { %v525_v29 = vmax.f32 %v486_v23, %v487_v25  ;;  %v396_v30 = vadd.f32 %v395_v28, %v3237_v63  ;;  %v1473_v23 = vld [vmem:[%s3902_s5 + $0x88] sm:$0xff]  ;;  %v1456_v25 = vld [vmem:[%s3902_s5] sm:$0xff] }
 0x14a   :  { %v488_v31 = vmax.f32 %v394_v27, 0.0  ;;  %v2261_v28 = vpack.c.bf16 %v1473_v23, %v1472_v21 }
 0x14b   :  { %v3309_v32 = vmax.f32 %v524_v20, %v525_v29  ;;  %v489_v33 = vmax.f32 %v396_v30, 0.0  ;;  %v399_v34 = vpop.f32.mrb[38].mxu0  ;;  %v1457_v29 = vld [vmem:[%s3902_s5 + $0x8] sm:$0xff]  ;;  %v1474_v30 = vld [vmem:[%s3902_s5 + $0x90] sm:$0xff] }
 0x14c   :  { %v400_v36 = vadd.f32 %v399_v34, %v3233_v62  ;;  %v401_v37 = vpop.f32.mrb[39].mxu0  ;;  %2262 = vmatprep.subr.bf16.mxu0 %v2261_v28  ;;  %v879_v28 = vld [vmem:[%s3900_s3 + $0x428] sm:$0xff] }
 0x14d   :  { %v526_v38 = vmax.f32 %v488_v31, %v489_v33  ;;  %v402_v39 = vadd.f32 %v401_v37, %v3237_v63  ;;  %1036 = vmatprep.mubr.f32.mxu1 %v3309_v32  ;;  %v1475_v31 = vld [vmem:[%s3902_s5 + $0x98] sm:$0xff] }
 0x14e   :  { %v490_v41 = vmax.f32 %v400_v36, 0.0  ;;  %1037 = vmatmul.mubr.f32.gmra.mrb[18].mxu1 %v3301_v14  ;;  %v2263_v36 = vpack.c.bf16 %v1457_v29, %v1456_v25  ;;  %v2265_v37 = vpack.c.bf16 %v1475_v31, %v1474_v30 }
 0x14f   :  { %v491_v42 = vmax.f32 %v402_v39, 0.0  ;;  %v405_v43 = vpop.f32.mrb[40].mxu0  ;;  %v1459_v39 = vld [vmem:[%s3902_s5 + $0x18] sm:$0xff] }
 0x150   :  { %v406_v44 = vadd.f32 %v405_v43, %v3233_v62  ;;  %v407_v45 = vpop.f32.mrb[41].mxu0  ;;  %v1477_v43 = vld [vmem:[%s3902_s5 + $0xa8] sm:$0xff]  ;;  %2264 = vmatpush3.bf16.msra.mxu0 %v2263_v36 }
 0x151   :  { %v527_v46 = vmax.f32 %v490_v41, %v491_v42  ;;  %v408_v47 = vadd.f32 %v407_v45, %v3237_v63  ;;  %v1476_v41 = vld [vmem:[%s3902_s5 + $0xa0] sm:$0xff]  ;;  %2266 = vmatprep.subr.bf16.mxu0 %v2265_v37 }
 0x152   :  { %v492_v48 = vmax.f32 %v406_v44, 0.0  ;;  %v1464_v37 = vld [vmem:[%s3902_s5 + $0x40] sm:$0xff] }
 0x153   :  { %v3317_v49 = vmax.f32 %v526_v38, %v527_v46  ;;  %v493_v51 = vmax.f32 %v408_v47, 0.0  ;;  %v411_v52 = vpop.f32.mrb[42].mxu0  ;;  %v1458_v38 = vld [vmem:[%s3902_s5 + $0x10] sm:$0xff] }
 0x154   :  { %v412_v53 = vadd.f32 %v411_v52, %v3233_v62  ;;  %v413_v54 = vpop.f32.mrb[43].mxu0  ;;  %v2267_v47 = vpack.c.bf16 %v1459_v39, %v1458_v38  ;;  %v2269_v52 = vpack.c.bf16 %v1477_v43, %v1476_v41  ;;  %v1482_v39 = vld [vmem:[%s3902_s5 + $0xd0] sm:$0xff]  ;;  %v1483_v41 = vld [vmem:[%s3902_s5 + $0xd8] sm:$0xff] }
 0x155   :  { %v528_v55 = vmax.f32 %v492_v48, %v493_v51  ;;  %v414_v60 = vadd.f32 %v413_v54, %v3237_v63  ;;  %1042 = vmatprep.mubr.f32.mxu1 %v3317_v49  ;;  %v1461_v54 = vld [vmem:[%s3902_s5 + $0x28] sm:$0xff] }
 0x156   :  { %v494_v0 = vmax.f32 %v412_v53, 0.0  ;;  %1043 = vmatmul.mubr.f32.gmra.mrb[20].mxu1 %v3309_v32  ;;  %v1460_v53 = vld [vmem:[%s3902_s5 + $0x20] sm:$0xff]  ;;  %2268 = vmatpush3.bf16.msra.mxu0 %v2267_v47  ;;  %v883_v47 = vld [vmem:[%s3900_s3 + $0x448] sm:$0xff] }
 0x157   :  { %v495_v1 = vmax.f32 %v414_v60, 0.0  ;;  %v417_v2 = vpop.f32.mrb[44].mxu0  ;;  %2270 = vmatprep.subr.bf16.mxu0 %v2269_v52 }
 0x158   :  { %v418_v3 = vadd.f32 %v417_v2, %v3233_v62  ;;  %v419_v4 = vpop.f32.mrb[45].mxu0 }
 0x159   :  { %v529_v5 = vmax.f32 %v494_v0, %v495_v1  ;;  %v420_v6 = vadd.f32 %v419_v4, %v3237_v63  ;;  %v1478_v0 = vld [vmem:[%s3902_s5 + $0xb0] sm:$0xff]  ;;  %v1479_v1 = vld [vmem:[%s3902_s5 + $0xb8] sm:$0xff] }
 0x15a   :  { %v496_v8 = vmax.f32 %v418_v3, 0.0 }
 0x15b   :  { %v3325_v9 = vmax.f32 %v528_v55, %v529_v5  ;;  %v497_v10 = vmax.f32 %v420_v6, 0.0  ;;  %v423_v11 = vpop.f32.mrb[46].mxu0  ;;  %v2271_v5 = vpack.c.bf16 %v1461_v54, %v1460_v53  ;;  %v2281_v53 = vpack.c.bf16 %v1483_v41, %v1482_v39  ;;  %v1466_v54 = vld [vmem:[%s3902_s5 + $0x50] sm:$0xff]  ;;  %v898_v39 = vld [vmem:[%s3900_s3 + $0x4c0] sm:$0xff] }
 0x15c   :  { %v424_v12 = vadd.f32 %v423_v11, %v3233_v62  ;;  %v425_v13 = vpop.f32.mrb[47].mxu0  ;;  %v1462_v11 = vld [vmem:[%s3902_s5 + $0x30] sm:$0xff] }
 0x15d   :  { %v530_v16 = vmax.f32 %v496_v8, %v497_v10  ;;  %v426_v17 = vadd.f32 %v425_v13, %v3237_v63  ;;  %1048 = vmatprep.mubr.f32.mxu1 %v3325_v9  ;;  %v2273_v10 = vpack.c.bf16 %v1479_v1, %v1478_v0  ;;  %2272 = vmatpush3.bf16.msra.mxu0 %v2271_v5  ;;  %v1485_v0 = vld [vmem:[%s3902_s5 + $0xe8] sm:$0xff]  ;;  %v900_v41 = vld [vmem:[%s3900_s3 + $0x4d0] sm:$0xff] }
 0x15e   :  { %v498_v18 = vmax.f32 %v424_v12, 0.0  ;;  %1049 = vmatmul.mubr.f32.gmra.mrb[22].mxu1 %v3317_v49  ;;  %v1463_v12 = vld [vmem:[%s3902_s5 + $0x38] sm:$0xff]  ;;  %v887_v5 = vld [vmem:[%s3900_s3 + $0x468] sm:$0xff] }
 0x15f   :  { %v499_v19 = vmax.f32 %v426_v17, 0.0  ;;  %v429_v20 = vpop.f32.mrb[48].mxu0  ;;  %v1480_v17 = vld [vmem:[%s3902_s5 + $0xc0] sm:$0xff]  ;;  %v2275_v25 = vpack.c.bf16 %v1463_v12, %v1462_v11  ;;  %2274 = vmatprep.subr.bf16.mxu0 %v2273_v10  ;;  %v1469_v12 = vld [vmem:[%s3902_s5 + $0x68] sm:$0xff] }
 0x160   :  { %v430_v26 = vadd.f32 %v429_v20, %v3233_v62  ;;  %v431_v27 = vpop.f32.mrb[49].mxu0  ;;  %v1468_v11 = vld [vmem:[%s3902_s5 + $0x60] sm:$0xff] }
 0x161   :  { %v531_v33 = vmax.f32 %v498_v18, %v499_v19  ;;  %v432_v34 = vadd.f32 %v431_v27, %v3237_v63  ;;  %v1481_v18 = vld [vmem:[%s3902_s5 + $0xc8] sm:$0xff]  ;;  %v876_v27 = vld [vmem:[%s3900_s3 + $0x410] sm:$0xff]  ;;  %2276 = vmatpush3.bf16.msra.mxu0 %v2275_v25 }
 0x162   :  { %v500_v42 = vmax.f32 %v430_v26, 0.0  ;;  %v874_v26 = vld [vmem:[%s3900_s3 + $0x400] sm:$0xff]  ;;  %v2277_v31 = vpack.c.bf16 %v1481_v18, %v1480_v17  ;;  %v888_v18 = vld [vmem:[%s3900_s3 + $0x470] sm:$0xff] }
 0x163   :  { %v3363_v44 = vmax.f32 %v530_v16, %v531_v33  ;;  %v501_v45 = vmax.f32 %v432_v34, 0.0  ;;  %v435_v46 = vpop.f32.mrb[50].mxu0  ;;  %v881_v33 = vld [vmem:[%s3900_s3 + $0x438] sm:$0xff]  ;;  %v886_v17 = vld [vmem:[%s3900_s3 + $0x460] sm:$0xff] }
 0x164   :  { %v436_v48 = vadd.f32 %v435_v46, %v3233_v62  ;;  %v437_v51 = vpop.f32.mrb[51].mxu0  ;;  %v2233_v43 = vpack.c.bf16 %v881_v33, %v879_v28  ;;  %v880_v46 = vld [vmem:[%s3900_s3 + $0x430] sm:$0xff]  ;;  %2278 = vmatprep.subr.bf16.mxu0 %v2277_v31  ;;  %v895_v28 = vld [vmem:[%s3900_s3 + $0x4a8] sm:$0xff]  ;;  %v894_v33 = vld [vmem:[%s3900_s3 + $0x4a0] sm:$0xff] }
 0x165   :  { %v532_v55 = vmax.f32 %v500_v42, %v501_v45  ;;  %v438_v60 = vadd.f32 %v437_v51, %v3237_v63  ;;  %1054 = vmatprep.mubr.f32.mxu1 %v3363_v44  ;;  %v878_v45 = vld [vmem:[%s3900_s3 + $0x420] sm:$0xff]  ;;  %v885_v51 = vld [vmem:[%s3900_s3 + $0x458] sm:$0xff] }
 0x166   :  { %v502_v2 = vmax.f32 %v436_v48, 0.0  ;;  %1055 = vmatmul.mubr.f32.gmra.mrb[24].mxu1 %v3325_v9  ;;  %v2235_v1 = vpack.c.bf16 %v880_v46, %v878_v45  ;;  %v902_v46 = vld [vmem:[%s3900_s3 + $0x4e0] sm:$0xff] }
 0x167   :  { %v503_v3 = vmax.f32 %v438_v60, 0.0  ;;  %v441_v4 = vpop.f32.mrb[52].mxu0  ;;  %v1484_v60 = vld [vmem:[%s3902_s5 + $0xe0] sm:$0xff] }
 0x168   :  { %v442_v6 = vadd.f32 %v441_v4, %v3233_v62  ;;  %v443_v8 = vpop.f32.mrb[53].mxu0  ;;  %v884_v4 = vld [vmem:[%s3900_s3 + $0x450] sm:$0xff]  ;;  %v2285_v10 = vpack.c.bf16 %v1485_v0, %v1484_v60  ;;  %v1556_v60 = vld [vmem:[%s3902_s5 + $0x320] sm:$0xff]  ;;  %v1557_v0 = vld [vmem:[%s3902_s5 + $0x328] sm:$0xff] }
 0x169   :  { %v533_v13 = vmax.f32 %v502_v2, %v503_v3  ;;  %v444_v16 = vadd.f32 %v443_v8, %v3237_v63  ;;  %v2237_v3 = vpack.c.bf16 %v885_v51, %v883_v47  ;;  %v889_v8 = vld [vmem:[%s3900_s3 + $0x478] sm:$0xff]  ;;  %v904_v47 = vld [vmem:[%s3900_s3 + $0x4f0] sm:$0xff]  ;;  %v2473_v51 = vmov 0.0|0.0  }
 0x16a   :  { %v504_v19 = vmax.f32 %v442_v6, 0.0 }
 0x16b   :  { %v3395_v20 = vmax.f32 %v532_v55, %v533_v13  ;;  %v505_v21 = vmax.f32 %v444_v16, 0.0  ;;  %v447_v23 = vpop.f32.mrb[54].mxu0  ;;  %v1467_v55 = vld [vmem:[%s3902_s5 + $0x58] sm:$0xff]  ;;  %v2241_v16 = vpack.c.bf16 %v889_v8, %v887_v5  ;;  %v1561_v5 = vld [vmem:[%s3902_s5 + $0x348] sm:$0xff]  ;;  %v1562_v8 = vld [vmem:[%s3902_s5 + $0x350] sm:$0xff] }
 0x16c   :  { %v448_v29 = vadd.f32 %v447_v23, %v3233_v62  ;;  %v449_v30 = vpop.f32.mrb[55].mxu0  ;;  %v1465_v62 = vld [vmem:[%s3902_s5 + $0x48] sm:$0xff]  ;;  %v2283_v6 = vpack.c.bf16 %v1467_v55, %v1466_v54  ;;  %v2243_v23 = vpack.c.bf16 %v888_v18, %v886_v17  ;;  %v1555_v54 = vld [vmem:[%s3902_s5 + $0x318] sm:$0xff]  ;;  %v1566_v17 = vld [vmem:[%s3902_s5 + $0x370] sm:$0xff] }
 0x16d   :  { %1060 = vmatprep.mubr.f32.mxu1 %v3395_v20  ;;  %v534_v34 = vmax.f32 %v504_v19, %v505_v21  ;;  %v450_v36 = vadd.f32 %v449_v30, %v3237_v63  ;;  %v2231_v63 = vpack.c.bf16 %v876_v27, %v874_v26  ;;  %v2279_v48 = vpack.c.bf16 %v1465_v62, %v1464_v37  ;;  %v893_v21 = vld [vmem:[%s3900_s3 + $0x498] sm:$0xff]  ;;  %v890_v26 = vld [vmem:[%s3900_s3 + $0x480] sm:$0xff]  ;;  %v892_v27 = vld [vmem:[%s3900_s3 + $0x490] sm:$0xff] }
 0x16e   :  { %1061 = vmatmul.mubr.f32.gmra.mrb[26].mxu1 %v3363_v44  ;;  %v506_v38 = vmax.f32 %v448_v29, 0.0  ;;  %v2287_v19 = vpack.c.bf16 %v1469_v12, %v1468_v11  ;;  %v897_v29 = vld [vmem:[%s3900_s3 + $0x4b8] sm:$0xff]  ;;  %v2247_v30 = vpack.c.bf16 %v892_v27, %v890_v26  ;;  %v1564_v12 = vld [vmem:[%s3902_s5 + $0x360] sm:$0xff] }
 0x16f   :  { %1131 = vmatprep.mubr.f32.mxu1 %v3253_v35  ;;  %v507_v42 = vmax.f32 %v450_v36, 0.0  ;;  %2280 = vmatpush3.bf16.msra.mxu0 %v2279_v48  ;;  %v2249_v31 = vpack.c.bf16 %v897_v29, %v895_v28  ;;  %v899_v36 = vld [vmem:[%s3900_s3 + $0x4c8] sm:$0xff]  ;;  %v901_v37 = vld [vmem:[%s3900_s3 + $0x4d8] sm:$0xff]  ;;  %v2259_v48 = vpack.c.bf16 %v904_v47, %v902_v46 }
 0x170   :  { %2282 = vmatprep.subr.bf16.mxu0 %v2281_v53  ;;  %v1554_v53 = vld [vmem:[%s3902_s5 + $0x310] sm:$0xff]  ;;  %v1567_v18 = vld [vmem:[%s3902_s5 + $0x378] sm:$0xff] }
 0x171   :  { %v535_v52 = vmax.f32 %v506_v38, %v507_v42  ;;  %v2253_v38 = vpack.c.bf16 %v901_v37, %v899_v36  ;;  %v905_v42 = vld [vmem:[%s3900_s3 + $0x4f8] sm:$0xff]  ;;  %v2361_v55 = vpack.c.bf16 %v1555_v54, %v1554_v53 }
 0x172   :  { %1132 = vmatmul.mubr.f32.vlgmr.msra.gmra.mrb[0].mxu1 %v3245_v22  ;;  %v882_v22 = vld [vmem:[%s3900_s3 + $0x440] sm:$0xff] }
 0x173   :  { %2232 = vmatpush1.bf16.msra.mxu1 %v2231_v63  ;;  %1137 = vmatprep.mubr.f32.mxu1 %v3261_v50  ;;  %v3452_v2 = vmax.f32 %v534_v34, %v535_v52  ;;  %v2239_v13 = vpack.c.bf16 %v884_v4, %v882_v22  ;;  %v896_v34 = vld [vmem:[%s3900_s3 + $0x4b0] sm:$0xff]  ;;  %v903_v63 = vld [vmem:[%s3900_s3 + $0x4e8] sm:$0xff]  ;;  %v1560_v4 = vld [vmem:[%s3902_s5 + $0x340] sm:$0xff] }
 0x174   :  { %2234 = vmatprep.subr.bf16.mxu1 %v2233_v43  ;;  %2284 = vmatpush3.bf16.msra.mxu0 %v2283_v6  ;;  %v2251_v62 = vpack.c.bf16 %v896_v34, %v894_v33  ;;  %v2255_v43 = vpack.c.bf16 %v900_v41, %v898_v39  ;;  %v2257_v45 = vpack.c.bf16 %v905_v42, %v903_v63 }
 0x175   :  { %2286 = vmatprep.subr.bf16.mxu0 %v2285_v10  ;;  %v2370_v6 = vpack.c.bf16 %v1561_v5, %v1560_v4  ;;  %v1563_v10 = vld [vmem:[%s3902_s5 + $0x358] sm:$0xff]  ;;  %v1508_v5 = vld [vmem:[%s3902_s5 + $0x1a0] sm:$0xff] }
 0x176   :  { %1138 = vmatmul.mubr.f32.gmra.mrb[2].mxu1 %v3253_v35  ;;  %v891_v35 = vld [vmem:[%s3900_s3 + $0x488] sm:$0xff]  ;;  %v2373_v11 = vpack.c.bf16 %v1563_v10, %v1562_v8 }
 0x177   :  { %1143 = vmatprep.mubr.f32.mxu1 %v3269_v7  ;;  %2236 = vmatpush1.bf16.msra.mxu1 %v2235_v1  ;;  %v2245_v25 = vpack.c.bf16 %v893_v21, %v891_v35  ;;  %v2364_v1 = vpack.c.bf16 %v1557_v0, %v1556_v60  ;;  %v906_v35 = vld [vmem:[%s3903_s4] sm:$0x3] }
 0x178   :  { %2238 = vmatprep.subr.bf16.mxu1 %v2237_v3  ;;  %2288 = vmatpush3.bf16.msra.mxu0 %v2287_v19  ;;  %v1559_v3 = vld [vmem:[%s3902_s5 + $0x338] sm:$0xff]  ;;  %v2379_v19 = vpack.c.bf16 %v1567_v18, %v1566_v17  ;;  %v3651_v21 = vrot.slane %v906_v35, %v126_v59  ;;  %v1492_v18 = vld [vmem:[%s3902_s5 + $0x120] sm:$0xff] }
 0x17a   :  { %1144 = vmatmul.mubr.f32.gmra.mrb[4].mxu1 %v3261_v50 }
 0x17b   :  { %1149 = vmatprep.mubr.f32.mxu1 %v3277_v24  ;;  %2240 = vmatpush1.bf16.msra.mxu1 %v2239_v13  ;;  %v1565_v13 = vld [vmem:[%s3902_s5 + $0x368] sm:$0xff] }
 0x17c   :  { %2242 = vmatprep.subr.bf16.mxu1 %v2241_v16  ;;  %v2376_v16 = vpack.c.bf16 %v1565_v13, %v1564_v12 }
 0x17e   :  { %1150 = vmatmul.mubr.f32.gmra.mrb[6].mxu1 %v3269_v7 }
 0x17f   :  { %1155 = vmatprep.mubr.f32.mxu1 %v3285_v40  ;;  %2244 = vmatpush1.bf16.msra.mxu1 %v2243_v23  ;;  %v3655_v23 = vrot.slane %v906_v35, %v130_v61 }
 0x180   :  { %2246 = vmatprep.subr.bf16.mxu1 %v2245_v25 }
 0x182   :  { %1156 = vmatmul.mubr.f32.gmra.mrb[8].mxu1 %v3277_v24 }
 0x183   :  { %1161 = vmatprep.mubr.f32.mxu1 %v3293_v57  ;;  %2248 = vmatpush1.bf16.msra.mxu1 %v2247_v30 }
 0x184   :  { %2250 = vmatprep.subr.bf16.mxu1 %v2249_v31 }
 0x186   :  { %1162 = vmatmul.mubr.f32.gmra.mrb[10].mxu1 %v3285_v40 }
 0x187   :  { %1167 = vmatprep.mubr.f32.mxu1 %v3301_v14  ;;  %2252 = vmatpush1.bf16.msra.mxu1 %v2251_v62 }
 0x188   :  { %2254 = vmatprep.subr.bf16.mxu1 %v2253_v38 }
 0x18a   :  { %1168 = vmatmul.mubr.f32.gmra.mrb[12].mxu1 %v3293_v57 }
 0x18b   :  { %1173 = vmatprep.mubr.f32.mxu1 %v3309_v32  ;;  %2256 = vmatpush1.bf16.msra.mxu1 %v2255_v43 }
 0x18c   :  { %2258 = vmatprep.subr.bf16.mxu1 %v2257_v45 }
 0x18e   :  { %1174 = vmatmul.mubr.f32.gmra.mrb[14].mxu1 %v3301_v14 }
 0x18f   :  { %1179 = vmatprep.mubr.f32.mxu1 %v3317_v49  ;;  %2260 = vmatpush1.bf16.msra.mxu1 %v2259_v48 }
 0x190   :  { %2357 = vmatprep.subr.bf16.mxu1 %v2473_v51 }
 0x192   :  { %1180 = vmatmul.mubr.f32.gmra.mrb[16].mxu1 %v3309_v32 }
 0x193   :  { %1185 = vmatprep.mubr.f32.mxu1 %v3325_v9 }
 0x196   :  { %1186 = vmatmul.mubr.f32.gmra.mrb[18].mxu1 %v3317_v49 }
 0x197   :  { %1191 = vmatprep.mubr.f32.mxu1 %v3363_v44 }
 0x19a   :  { %1192 = vmatmul.mubr.f32.gmra.mrb[20].mxu1 %v3325_v9 }
 0x19b   :  { %1197 = vmatprep.mubr.f32.mxu1 %v3395_v20 }
 0x19e   :  { %1198 = vmatmul.mubr.f32.gmra.mrb[22].mxu1 %v3363_v44 }
 0x19f   :  { %1203 = vmatprep.mubr.f32.mxu1 %v3452_v2 }
 0x1a2   :  { %1204 = vmatmul.mubr.f32.gmra.mrb[24].mxu1 %v3395_v20 }
 0x1a3   :  { %1209 = vmatprep.mubr.f32.mxu1 %v2472_v15 }
 0x1a6   :  { %1210 = vmatmul.mubr.f32.gmra.mrb[26].mxu1 %v3452_v2 }
 0x1a7   :  { %1280 = vmatprep.mubr.f32.mxu1 %v2472_v15 }
 0x1aa   :  { %1281 = vmatmul.mubr.f32.vlgmr.msra.gmra.mrb[0].mxu1 %v3261_v50  ;;  %v1486_v50 = vld [vmem:[%s3902_s5 + $0xf0] sm:$0xff] }
 0x1ab   :  { %1286 = vmatprep.mubr.f32.mxu1 %v2472_v15 }
 0x1ae   :  { %1287 = vmatmul.mubr.f32.gmra.mrb[2].mxu1 %v3269_v7  ;;  %v1487_v7 = vld [vmem:[%s3902_s5 + $0xf8] sm:$0xff] }
 0x1af   :  { %1292 = vmatprep.mubr.f32.mxu1 %v2472_v15 }
 0x1b2   :  { %1293 = vmatmul.mubr.f32.gmra.mrb[4].mxu1 %v3277_v24  ;;  %v2289_v24 = vpack.c.bf16 %v1487_v7, %v1486_v50 }
 0x1b3   :  { %1298 = vmatprep.mubr.f32.mxu1 %v2472_v15 }
 0x1b4   :  { %2290 = vmatprep.subr.bf16.mxu0 %v2289_v24 }
 0x1b6   :  { %1299 = vmatmul.mubr.f32.gmra.mrb[6].mxu1 %v3285_v40  ;;  %v1470_v40 = vld [vmem:[%s3902_s5 + $0x70] sm:$0xff] }
 0x1b7   :  { %1304 = vmatprep.mubr.f32.mxu1 %v2472_v15 }
 0x1ba   :  { %1305 = vmatmul.mubr.f32.gmra.mrb[8].mxu1 %v3293_v57  ;;  %v1471_v57 = vld [vmem:[%s3902_s5 + $0x78] sm:$0xff] }
 0x1bb   :  { %1310 = vmatprep.mubr.f32.mxu1 %v2472_v15 }
 0x1be   :  { %1311 = vmatmul.mubr.f32.gmra.mrb[10].mxu1 %v3301_v14  ;;  %v2291_v14 = vpack.c.bf16 %v1471_v57, %v1470_v40 }
 0x1bf   :  { %1316 = vmatprep.mubr.f32.mxu1 %v2472_v15 }
 0x1c0   :  { %2292 = vmatpush3.bf16.msra.mxu0 %v2291_v14  ;;  %v1488_v14 = vld [vmem:[%s3902_s5 + $0x100] sm:$0xff] }
 0x1c2   :  { %1317 = vmatmul.mubr.f32.gmra.mrb[12].mxu1 %v3309_v32  ;;  %v1504_v32 = vld [vmem:[%s3902_s5 + $0x180] sm:$0xff] }
 0x1c3   :  { %1322 = vmatprep.mubr.f32.mxu1 %v2472_v15 }
 0x1c6   :  { %1323 = vmatmul.mubr.f32.gmra.mrb[14].mxu1 %v3317_v49  ;;  %v1505_v49 = vld [vmem:[%s3902_s5 + $0x188] sm:$0xff] }
 0x1c7   :  { %1328 = vmatprep.mubr.f32.mxu1 %v2472_v15 }
 0x1ca   :  { %1329 = vmatmul.mubr.f32.gmra.mrb[16].mxu1 %v3325_v9  ;;  %v2293_v9 = vpack.c.bf16 %v1505_v49, %v1504_v32  ;;  %v1489_v32 = vld [vmem:[%s3902_s5 + $0x108] sm:$0xff] }
 0x1cb   :  { %1334 = vmatprep.mubr.f32.mxu1 %v2472_v15 }
 0x1cc   :  { %2294 = vmatprep.subr.bf16.mxu0 %v2293_v9 }
 0x1ce   :  { %1335 = vmatmul.mubr.f32.gmra.mrb[18].mxu1 %v3363_v44  ;;  %v1552_v44 = vld [vmem:[%s3902_s5 + $0x300] sm:$0xff] }
 0x1cf   :  { %1340 = vmatprep.mubr.f32.mxu1 %v2472_v15 }
 0x1d2   :  { %1341 = vmatmul.mubr.f32.gmra.mrb[20].mxu1 %v3395_v20  ;;  %v1553_v20 = vld [vmem:[%s3902_s5 + $0x308] sm:$0xff] }
 0x1d3   :  { %1346 = vmatprep.mubr.f32.mxu1 %v2472_v15  ;;  %v2358_v52 = vpack.c.bf16 %v1553_v20, %v1552_v44  ;;  %v1506_v44 = vld [vmem:[%s3902_s5 + $0x190] sm:$0xff]  ;;  %v1507_v20 = vld [vmem:[%s3902_s5 + $0x198] sm:$0xff] }
 0x1d5   :  { %2359 = vmatpush3.bf16.msra.mxu1 %v2358_v52 }
 0x1d6   :  { %1347 = vmatmul.mubr.f32.gmra.mrb[22].mxu1 %v3452_v2  ;;  %2360 = vmatprep.subr.bf16.mxu1 %v2473_v51  ;;  %v1558_v2 = vld [vmem:[%s3902_s5 + $0x330] sm:$0xff] }
 0x1d7   :  { %1352 = vmatprep.mubr.f32.mxu1 %v2472_v15  ;;  %v2367_v22 = vpack.c.bf16 %v1559_v3, %v1558_v2  ;;  %v1490_v2 = vld [vmem:[%s3902_s5 + $0x110] sm:$0xff]  ;;  %v1491_v3 = vld [vmem:[%s3902_s5 + $0x118] sm:$0xff] }
 0x1d8   :  { %v2299_v12 = vpack.c.bf16 %v1491_v3, %v1490_v2 }
 0x1d9   :  { %2362 = vmatpush3.bf16.msra.mxu1 %v2361_v55  ;;  %v2295_v55 = vpack.c.bf16 %v1489_v32, %v1488_v14 }
 0x1da   :  { %1353 = vmatmul.mubr.f32.gmra.mrb[24].mxu1 %v2472_v15  ;;  %2363 = vmatprep.subr.bf16.mxu1 %v2473_v51 }
 0x1db   :  { %1358 = vmatprep.mubr.f32.mxu1 %v2472_v15 }
 0x1dd   :  { %2365 = vmatpush3.bf16.msra.mxu1 %v2364_v1  ;;  %v2297_v1 = vpack.c.bf16 %v1507_v20, %v1506_v44 }
 0x1de   :  { %1359 = vmatmul.mubr.f32.gmra.mrb[26].mxu1 %v2472_v15  ;;  %2366 = vmatprep.subr.bf16.mxu1 %v2473_v51 }
 0x1df   :  { %2058 = vmatprep.mubr.msk.f32.mxu1 %vm2474_vm1, %v2472_v15 }
 0x1e1   :  { %2368 = vmatpush3.bf16.msra.mxu1 %v2367_v22 }
 0x1e2   :  { %2369 = vmatprep.subr.bf16.mxu1 %v2473_v51 }
 0x1e5   :  { %2371 = vmatpush3.bf16.msra.mxu1 %v2370_v6  ;;  %v1509_v6 = vld [vmem:[%s3902_s5 + $0x1a8] sm:$0xff] }
 0x1e6   :  { %2372 = vmatprep.subr.bf16.mxu1 %v2473_v51  ;;  %v2301_v17 = vpack.c.bf16 %v1509_v6, %v1508_v5 }
 0x1e9   :  { %2374 = vmatpush3.bf16.msra.mxu1 %v2373_v11 }
 0x1ea   :  { %2375 = vmatprep.subr.bf16.mxu1 %v2473_v51 }
 0x1ed   :  { %2377 = vmatpush3.bf16.msra.mxu1 %v2376_v16 }
 0x1ee   :  { %2378 = vmatprep.subr.bf16.mxu1 %v2473_v51 }
 0x1f1   :  { %2380 = vmatpush3.bf16.msra.mxu1 %v2379_v19  ;;  %v1493_v19 = vld [vmem:[%s3902_s5 + $0x128] sm:$0xff] }
 0x27d   :  { %v1282_v25 = vpop.f32.mrb[0].mxu1 }
 0x27e   :  { %v2381_v26 = vadd.f32 %v1282_v25, %v3651_v21  ;;  %v1284_v27 = vpop.f32.mrb[1].mxu1 }
 0x27f   :  { %v2382_v28 = vadd.f32 %v1284_v27, %v3655_v23  ;;  %v1511_v27 = vld [vmem:[%s3902_s5 + $0x1b8] sm:$0xff] }
 0x280   :  { %v1365_v29 = vmax.f32 %v2381_v26, 0.0  ;;  %v1510_v26 = vld [vmem:[%s3902_s5 + $0x1b0] sm:$0xff] }
 0x281   :  { %v1366_v15 = vmax.f32 %v2382_v28, 0.0  ;;  %v1288_v30 = vpop.f32.mrb[2].mxu1 }
 0x282   :  { %v2383_v31 = vadd.f32 %v1288_v30, %v3651_v21  ;;  %v1290_v33 = vpop.f32.mrb[3].mxu1 }
 0x283   :  { %v1393_v34 = vmax.f32 %v1365_v29, %v1366_v15  ;;  %v2384_v59 = vadd.f32 %v1290_v33, %v3655_v23 }
 0x284   :  { %v1367_v36 = vmax.f32 %v2383_v31, 0.0  ;;  %v2303_v31 = vpack.c.bf16 %v1493_v19, %v1492_v18 }
 0x285   :  { %v1368_v37 = vmax.f32 %v2384_v59, 0.0  ;;  %v1294_v58 = vpop.f32.mrb[4].mxu1  ;;  %v2305_v59 = vpack.c.bf16 %v1511_v27, %v1510_v26 }
 0x286   :  { %v2385_v61 = vadd.f32 %v1294_v58, %v3651_v21  ;;  %v1296_v62 = vpop.f32.mrb[5].mxu1 }
 0x287   :  { %v1394_v38 = vmax.f32 %v1367_v36, %v1368_v37  ;;  %v2386_v39 = vadd.f32 %v1296_v62, %v3655_v23  ;;  %v1494_v36 = vld [vmem:[%s3902_s5 + $0x130] sm:$0xff]  ;;  %v1495_v37 = vld [vmem:[%s3902_s5 + $0x138] sm:$0xff]  ;;  %v1512_v62 = vld [vmem:[%s3902_s5 + $0x1c0] sm:$0xff] }
 0x288   :  { %v1369_v41 = vmax.f32 %v2385_v61, 0.0 }
 0x289   :  { %v1423_v63 = vmax.f32 %v1393_v34, %v1394_v38  ;;  %v1370_v42 = vmax.f32 %v2386_v39, 0.0  ;;  %v1300_v43 = vpop.f32.mrb[6].mxu1  ;;  %v1513_v38 = vld [vmem:[%s3902_s5 + $0x1c8] sm:$0xff] }
 0x28a   :  { %v2387_v45 = vadd.f32 %v1300_v43, %v3651_v21  ;;  %v1302_v46 = vpop.f32.mrb[7].mxu1 }
 0x28b   :  { %v1395_v47 = vmax.f32 %v1369_v41, %v1370_v42  ;;  %v2388_v48 = vadd.f32 %v1302_v46, %v3655_v23  ;;  %v2307_v42 = vpack.c.bf16 %v1495_v37, %v1494_v36  ;;  %v2309_v46 = vpack.c.bf16 %v1513_v38, %v1512_v62  ;;  %v1536_v36 = vld [vmem:[%s3902_s5 + $0x280] sm:$0xff]  ;;  %v1537_v37 = vld [vmem:[%s3902_s5 + $0x288] sm:$0xff] }
 0x28c   :  { %v1371_v50 = vmax.f32 %v2387_v45, 0.0 }
 0x28d   :  { %v1372_v7 = vmax.f32 %v2388_v48, 0.0  ;;  %v1306_v24 = vpop.f32.mrb[8].mxu1  ;;  %v1497_v48 = vld [vmem:[%s3902_s5 + $0x148] sm:$0xff] }
 0x28e   :  { %v2389_v40 = vadd.f32 %v1306_v24, %v3651_v21  ;;  %v1308_v57 = vpop.f32.mrb[9].mxu1  ;;  %v1514_v24 = vld [vmem:[%s3902_s5 + $0x1d0] sm:$0xff] }
 0x28f   :  { %v1396_v49 = vmax.f32 %v1371_v50, %v1372_v7  ;;  %v2390_v9 = vadd.f32 %v1308_v57, %v3655_v23 }
 0x290   :  { %v1373_v51 = vmax.f32 %v2389_v40, 0.0  ;;  %v1515_v40 = vld [vmem:[%s3902_s5 + $0x1d8] sm:$0xff] }
 0x291   :  { %v1374_v52 = vmax.f32 %v2390_v9, 0.0  ;;  %v1312_v53 = vpop.f32.mrb[10].mxu1  ;;  %v1427_v54 = vmax.f32 %v1395_v47, %v1396_v49  ;;  %v1496_v47 = vld [vmem:[%s3902_s5 + $0x140] sm:$0xff] }
 0x292   :  { %v2391_v60 = vadd.f32 %v1312_v53, %v3651_v21  ;;  %v1314_v0 = vpop.f32.mrb[11].mxu1  ;;  %v2311_v9 = vpack.c.bf16 %v1497_v48, %v1496_v47  ;;  %v1499_v53 = vld [vmem:[%s3902_s5 + $0x158] sm:$0xff]  ;;  %v1538_v47 = vld [vmem:[%s3902_s5 + $0x290] sm:$0xff] }
 0x293   :  { %v3686_v22 = vmax.f32 %v1373_v51, %v1374_v52  ;;  %v2392_v4 = vadd.f32 %v1314_v0, %v3655_v23  ;;  %1639 = vmatprep.mubr.f32.mxu0 %v1427_v54  ;;  %v2313_v51 = vpack.c.bf16 %v1515_v40, %v1514_v24  ;;  %v1498_v52 = vld [vmem:[%s3902_s5 + $0x150] sm:$0xff]  ;;  %v1517_v0 = vld [vmem:[%s3902_s5 + $0x1e8] sm:$0xff]  ;;  %v1539_v48 = vld [vmem:[%s3902_s5 + $0x298] sm:$0xff] }
 0x294   :  { %v1375_v8 = vmax.f32 %v2391_v60, 0.0  ;;  %1640 = vmatmul.mubr.f32.vlgmr.msra.gmra.mrb[56].mxu0 %v1423_v63  ;;  %v1516_v60 = vld [vmem:[%s3902_s5 + $0x1e0] sm:$0xff] }
 0x295   :  { %v1376_v10 = vmax.f32 %v2392_v4, 0.0  ;;  %2296 = vmatpush3.bf16.msra.mxu0 %v2295_v55  ;;  %v1318_v11 = vpop.f32.mrb[12].mxu1  ;;  %v2315_v4 = vpack.c.bf16 %v1499_v53, %v1498_v52  ;;  %v1540_v52 = vld [vmem:[%s3902_s5 + $0x2a0] sm:$0xff] }
 0x296   :  { %v2393_v13 = vadd.f32 %v1318_v11, %v3651_v21  ;;  %v1320_v16 = vpop.f32.mrb[13].mxu1  ;;  %2298 = vmatprep.subr.bf16.mxu0 %v2297_v1  ;;  %v1501_v11 = vld [vmem:[%s3902_s5 + $0x168] sm:$0xff] }
 0x297   :  { %v3702_v35 = vmax.f32 %v1375_v8, %v1376_v10  ;;  %v2394_v25 = vadd.f32 %v1320_v16, %v3655_v23  ;;  %v2317_v8 = vpack.c.bf16 %v1517_v0, %v1516_v60  ;;  %v1500_v10 = vld [vmem:[%s3902_s5 + $0x160] sm:$0xff]  ;;  %v1518_v16 = vld [vmem:[%s3902_s5 + $0x1f0] sm:$0xff] }
 0x298   :  { %v1377_v28 = vmax.f32 %v2393_v13, 0.0  ;;  %v2319_v27 = vpack.c.bf16 %v1501_v11, %v1500_v10  ;;  %v1545_v10 = vld [vmem:[%s3902_s5 + $0x2c8] sm:$0xff] }
 0x299   :  { %v1431_v29 = vmax.f32 %v3686_v22, %v3702_v35  ;;  %v1378_v15 = vmax.f32 %v2394_v25, 0.0  ;;  %2300 = vmatpush3.bf16.msra.mxu0 %v2299_v12  ;;  %v1324_v30 = vpop.f32.mrb[14].mxu1  ;;  %v1542_v22 = vld [vmem:[%s3902_s5 + $0x2b0] sm:$0xff]  ;;  %v1543_v35 = vld [vmem:[%s3902_s5 + $0x2b8] sm:$0xff] }
 0x29a   :  { %v2395_v33 = vadd.f32 %v1324_v30, %v3651_v21  ;;  %v1326_v34 = vpop.f32.mrb[15].mxu1  ;;  %2302 = vmatprep.subr.bf16.mxu0 %v2301_v17  ;;  %v1519_v17 = vld [vmem:[%s3902_s5 + $0x1f8] sm:$0xff] }
 0x29b   :  { %v1399_v58 = vmax.f32 %v1377_v28, %v1378_v15  ;;  %v2396_v61 = vadd.f32 %v1326_v34, %v3655_v23  ;;  %v2321_v30 = vpack.c.bf16 %v1519_v17, %v1518_v16  ;;  %v1528_v16 = vld [vmem:[%s3902_s5 + $0x240] sm:$0xff]  ;;  %v1529_v17 = vld [vmem:[%s3902_s5 + $0x248] sm:$0xff] }
 0x29c   :  { %v1379_v39 = vmax.f32 %v2395_v33, 0.0  ;;  %v1503_v33 = vld [vmem:[%s3902_s5 + $0x178] sm:$0xff] }
 0x29d   :  { %v1380_v41 = vmax.f32 %v2396_v61, 0.0  ;;  %2304 = vmatpush3.bf16.msra.mxu0 %v2303_v31  ;;  %v1330_v63 = vpop.f32.mrb[16].mxu1  ;;  %v1502_v31 = vld [vmem:[%s3902_s5 + $0x170] sm:$0xff] }
 0x29e   :  { %v2397_v43 = vadd.f32 %v1330_v63, %v3651_v21  ;;  %v1332_v45 = vpop.f32.mrb[17].mxu1  ;;  %2306 = vmatprep.subr.bf16.mxu0 %v2305_v59  ;;  %v2323_v38 = vpack.c.bf16 %v1503_v33, %v1502_v31  ;;  %v2325_v63 = vpack.c.bf16 %v1537_v37, %v1536_v36  ;;  %v1549_v31 = vld [vmem:[%s3902_s5 + $0x2e8] sm:$0xff]  ;;  %v1550_v37 = vld [vmem:[%s3902_s5 + $0x2f0] sm:$0xff] }
 0x29f   :  { %v1400_v50 = vmax.f32 %v1379_v39, %v1380_v41  ;;  %v2398_v7 = vadd.f32 %v1332_v45, %v3655_v23  ;;  %v1533_v36 = vld [vmem:[%s3902_s5 + $0x268] sm:$0xff] }
 0x2a0   :  { %v1381_v57 = vmax.f32 %v2397_v43, 0.0  ;;  %v1521_v43 = vld [vmem:[%s3902_s5 + $0x208] sm:$0xff] }
 0x2a1   :  { %v1382_v14 = vmax.f32 %v2398_v7, 0.0  ;;  %2308 = vmatpush3.bf16.msra.mxu0 %v2307_v42  ;;  %v1336_v32 = vpop.f32.mrb[18].mxu1  ;;  %v1435_v49 = vmax.f32 %v1399_v58, %v1400_v50  ;;  %v1520_v42 = vld [vmem:[%s3902_s5 + $0x200] sm:$0xff] }
 0x2a2   :  { %v2399_v44 = vadd.f32 %v1336_v32, %v3651_v21  ;;  %v1338_v20 = vpop.f32.mrb[19].mxu1  ;;  %2310 = vmatprep.subr.bf16.mxu0 %v2309_v46  ;;  %v2327_v40 = vpack.c.bf16 %v1521_v43, %v1520_v42 }
 0x2a3   :  { %v3748_v54 = vmax.f32 %v1381_v57, %v1382_v14  ;;  %v2400_v55 = vadd.f32 %v1338_v20, %v3655_v23  ;;  %1709 = vmatprep.mubr.f32.mxu0 %v1435_v49  ;;  %v2329_v49 = vpack.c.bf16 %v1539_v48, %v1538_v47 }
 0x2a4   :  { %v1383_v1 = vmax.f32 %v2399_v44, 0.0  ;;  %v1523_v44 = vld [vmem:[%s3902_s5 + $0x218] sm:$0xff] }
 0x2a5   :  { %v1384_v2 = vmax.f32 %v2400_v55, 0.0  ;;  %2312 = vmatpush3.bf16.msra.mxu0 %v2311_v9  ;;  %v1342_v3 = vpop.f32.mrb[20].mxu1  ;;  %v1522_v9 = vld [vmem:[%s3902_s5 + $0x210] sm:$0xff] }
 0x2a6   :  { %v2401_v5 = vadd.f32 %v1342_v3, %v3651_v21  ;;  %v1344_v6 = vpop.f32.mrb[21].mxu1  ;;  %2314 = vmatprep.subr.bf16.mxu0 %v2313_v51  ;;  %v2331_v60 = vpack.c.bf16 %v1523_v44, %v1522_v9 }
 0x2a7   :  { %v3764_v12 = vmax.f32 %v1383_v1, %v1384_v2  ;;  %v2402_v13 = vadd.f32 %v1344_v6, %v3655_v23  ;;  %v1525_v1 = vld [vmem:[%s3902_s5 + $0x228] sm:$0xff]  ;;  %v1527_v6 = vld [vmem:[%s3902_s5 + $0x238] sm:$0xff] }
 0x2a8   :  { %v1385_v18 = vmax.f32 %v2401_v5, 0.0  ;;  %v1526_v5 = vld [vmem:[%s3902_s5 + $0x230] sm:$0xff] }
 0x2a9   :  { %v1439_v19 = vmax.f32 %v3748_v54, %v3764_v12  ;;  %v1386_v25 = vmax.f32 %v2402_v13, 0.0  ;;  %2316 = vmatpush3.bf16.msra.mxu0 %v2315_v4  ;;  %v1348_v26 = vpop.f32.mrb[22].mxu1  ;;  %v2337_v4 = vpack.c.bf16 %v1543_v35, %v1542_v22  ;;  %v2339_v11 = vpack.c.bf16 %v1527_v6, %v1526_v5 }
 0x2aa   :  { %v2403_v28 = vadd.f32 %v1348_v26, %v3651_v21  ;;  %v1350_v15 = vpop.f32.mrb[23].mxu1  ;;  %2318 = vmatprep.subr.bf16.mxu0 %v2317_v8  ;;  %v1544_v8 = vld [vmem:[%s3902_s5 + $0x2c0] sm:$0xff]  ;;  %v2343_v26 = vpack.c.bf16 %v1529_v17, %v1528_v16 }
 0x2ab   :  { %v1403_v34 = vmax.f32 %v1385_v18, %v1386_v25  ;;  %v2404_v59 = vadd.f32 %v1350_v15, %v3655_v23  ;;  %v2341_v13 = vpack.c.bf16 %v1545_v10, %v1544_v8  ;;  %v1546_v18 = vld [vmem:[%s3902_s5 + $0x2d0] sm:$0xff]  ;;  %v1547_v25 = vld [vmem:[%s3902_s5 + $0x2d8] sm:$0xff] }
 0x2ac   :  { %v1387_v58 = vmax.f32 %v2403_v28, 0.0  ;;  %v1530_v28 = vld [vmem:[%s3902_s5 + $0x250] sm:$0xff]  ;;  %v1531_v15 = vld [vmem:[%s3902_s5 + $0x258] sm:$0xff] }
 0x2ad   :  { %v1388_v61 = vmax.f32 %v2404_v59, 0.0  ;;  %2320 = vmatpush3.bf16.msra.mxu0 %v2319_v27  ;;  %v1354_v62 = vpop.f32.mrb[24].mxu1  ;;  %v2345_v27 = vpack.c.bf16 %v1547_v25, %v1546_v18  ;;  %v2347_v33 = vpack.c.bf16 %v1531_v15, %v1530_v28  ;;  %v1532_v59 = vld [vmem:[%s3902_s5 + $0x260] sm:$0xff] }
 0x2ae   :  { %v2405_v39 = vadd.f32 %v1354_v62, %v3651_v21  ;;  %v1356_v41 = vpop.f32.mrb[25].mxu1  ;;  %2322 = vmatprep.subr.bf16.mxu0 %v2321_v30  ;;  %v1548_v30 = vld [vmem:[%s3902_s5 + $0x2e0] sm:$0xff] }
 0x2af   :  { %v1404_v45 = vmax.f32 %v1387_v58, %v1388_v61  ;;  %v2406_v46 = vadd.f32 %v1356_v41, %v3655_v23  ;;  %v1551_v58 = vld [vmem:[%s3902_s5 + $0x2f8] sm:$0xff]  ;;  %v2351_v61 = vpack.c.bf16 %v1533_v36, %v1532_v59 }
 0x2b0   :  { %v1389_v50 = vmax.f32 %v2405_v39, 0.0  ;;  %v2353_v62 = vpack.c.bf16 %v1551_v58, %v1550_v37  ;;  %v1535_v39 = vld [vmem:[%s3902_s5 + $0x278] sm:$0xff] }
 0x2b1   :  { %v1390_v7 = vmax.f32 %v2406_v46, 0.0  ;;  %2324 = vmatpush3.bf16.msra.mxu0 %v2323_v38  ;;  %v1360_v24 = vpop.f32.mrb[26].mxu1  ;;  %v1443_v57 = vmax.f32 %v1403_v34, %v1404_v45  ;;  %v2349_v34 = vpack.c.bf16 %v1549_v31, %v1548_v30  ;;  %v1534_v38 = vld [vmem:[%s3902_s5 + $0x270] sm:$0xff]  ;;  %v1903_v45 = vld [vmem:[%s3904_s6] ss:$0 sm:$0xff] }
 0x2b2   :  { %v2407_v14 = vadd.f32 %v1360_v24, %v3651_v21  ;;  %v1362_v32 = vpop.f32.mrb[27].mxu1  ;;  %2326 = vmatprep.subr.bf16.mxu0 %v2325_v63  ;;  %v1541_v21 = vld [vmem:[%s3902_s5 + $0x2a8] sm:$0xff]  ;;  %v2355_v41 = vpack.c.bf16 %v1535_v39, %v1534_v38 }
 0x2b3   :  { %v1405_v20 = vmax.f32 %v1389_v50, %v1390_v7  ;;  %v2408_v51 = vadd.f32 %v1362_v32, %v3655_v23  ;;  %v2333_v0 = vpack.c.bf16 %v1541_v21, %v1540_v52  ;;  %v1524_v23 = vld [vmem:[%s3902_s5 + $0x220] sm:$0xff]  ;;  %v1856_v32 = vand.u32 127, %v124_v56 }
 0x2b4   :  { %v1391_v53 = vmax.f32 %v2407_v14, 0.0  ;;  %1710 = vmatmul.mubr.f32.vlgmr.msra.gmra.mrb[58].mxu0 %v1431_v29  ;;  %v2335_v3 = vpack.c.bf16 %v1525_v1, %v1524_v23 }
 0x2b5   :  { %v1392_v55 = vmax.f32 %v2408_v51, 0.0  ;;  %2328 = vmatpush3.bf16.msra.mxu0 %v2327_v40  ;;  %1779 = vmatprep.mubr.f32.mxu0 %v1443_v57  ;;  %vm1857_vm2 = vcmp.lt.s32.totalorder %v1856_v32, 10 }
 0x2b6   :  { %2330 = vmatprep.subr.bf16.mxu0 %v2329_v49 }
 0x2b7   :  { %v1406_v2 = vmax.f32 %v1391_v53, %v1392_v55 }
 0x2b9   :  { %v1447_v29 = vmax.f32 %v1405_v20, %v1406_v2  ;;  %2332 = vmatpush3.bf16.msra.mxu0 %v2331_v60 }
 0x2ba   :  { %2334 = vmatprep.subr.bf16.mxu0 %v2333_v0 }
 0x2bb   :  { %2059 = vmatmul.mubr.f32.vlgmr.msra.gmra.mrb[28].mxu1 %v1447_v29 }
 0x2bd   :  { %2336 = vmatpush3.bf16.msra.mxu0 %v2335_v3 }
 0x2be   :  { %2338 = vmatprep.subr.bf16.mxu0 %v2337_v4 }
 0x2c1   :  { %2340 = vmatpush3.bf16.msra.mxu0 %v2339_v11 }
 0x2c2   :  { %2342 = vmatprep.subr.bf16.mxu0 %v2341_v13 }
 0x2c5   :  { %2344 = vmatpush3.bf16.msra.mxu0 %v2343_v26 }
 0x2c6   :  { %2346 = vmatprep.subr.bf16.mxu0 %v2345_v27 }
 0x2c9   :  { %2348 = vmatpush3.bf16.msra.mxu0 %v2347_v33 }
 0x2ca   :  { %2350 = vmatprep.subr.bf16.mxu0 %v2349_v34 }
 0x2cd   :  { %2352 = vmatpush3.bf16.msra.mxu0 %v2351_v61 }
 0x2ce   :  { %2354 = vmatprep.subr.bf16.mxu0 %v2353_v62 }
 0x2d1   :  { %2356 = vmatpush3.bf16.msra.mxu0 %v2355_v41 }
 0x2d4   :  { %1780 = vmatmul.mubr.f32.vlgmr.msra.gmra.mrb[60].mxu0 %v1439_v19 }
 0x367   :  { %v1936_v63 = vpop.f32.mrb[56].mxu0 }
 0x368   :  { %v1937_v42 = vpop.f32.mrb[57].mxu0 }
 0x369   :  { %v1938_v43 = vadd.f32 %v1937_v42, %v1936_v63 }
 0x36b   :  { %v1642_v48 = vadd.f32 %v1938_v43, %v1903_v45 }
 0x387   :  { %v1971_v46 = vpop.f32.mrb[58].mxu0 }
 0x388   :  { %v1972_v47 = vpop.f32.mrb[59].mxu0 }
 0x389   :  { %v1973_v50 = vadd.f32 %v1972_v47, %v1971_v46 }
 0x38b   :  { %v1712_v7 = vadd.f32 %v1973_v50, %v1642_v48 }
 0x38e   :  { %v1851_v24 = vpop.f32.mrb[28].mxu1 }
 0x38f   :  { %v2060_v40 = vpop.f32.mrb[29].mxu1 }
 0x3a7   :  { %v2006_v57 = vpop.f32.mrb[60].mxu0 }
 0x3a8   :  { %v2007_v14 = vpop.f32.mrb[61].mxu0 }
 0x3a9   :  { %v2008_v54 = vadd.f32 %v2007_v14, %v2006_v57 }
 0x3ab   :  { %v1782_v12 = vadd.f32 %v2008_v54, %v1712_v7 }
 0x3ad   :  { %v1852_v19 = vadd.f32 %v1851_v24, %v1782_v12 }
 0x3af   :  { %v1858_v49 = vsel %vm1857_vm2, %v1852_v19, -inf }
 0x3b0   :  { %1859 = vmax.xlane.f32.xlu0 %v1858_v49 }
 0x43d   :  { %v1860_v9 = vpop.xlane.xlu0 %1859 }
 0x43e   :  { %v1861_v44 = vsub.f32 %v1858_v49, %v1860_v9 }
 0x440   :  { %v1862_v20 = vmul.f32 1.442695, %v1861_v44 }
 0x442   :  { %2468 = vpow2.f32 %v1862_v20 }
 0x44c   :  { %v2469_v51 = vpop.eup %2468 }
 0x44d   :  { %1864 = vadd.xlane.f32.xlu0 %v2469_v51 }
 0x4da   :  { %v1865_v52 = vpop.xlane.xlu0 %1864 }
 0x4db   :  { %2470 = vlog2.f32 %v1865_v52 }
 0x4e5   :  { %v2471_v21 = vpop.eup %2470 }
 0x4e6   :  { %v1867_v53 = vmul.f32 0.6931472, %v2471_v21 }
 0x4e8   :  { %v1868_v55 = vsub.f32 %v1861_v44, %v1867_v53 }
 0x4ea   :  { %v1869_v56 = vsel %vm1857_vm2, %v1868_v55, 0.0 }
 0x4eb   :  { %1870 = vst [vmem:[%s3905_s7] sm:$0xff] %v1869_v56 }

</bundles_post_ra>
